<compile_context>
chip_gen: v6e
topology: v6e:2x2x1
jax: 0.10.0
libtpu: 0.0.40
codegen_flags: <defaults>
</compile_context>

<pallas_src>
import jax
import jax.numpy as jnp
import numpy as np
from jax.experimental import pallas as pl
from jax.experimental.pallas import tpu as pltpu

# ---- fixed problem sizes implied by the torch module -----------------------
C_HALF = 32          # channels after summing the 2-way split
H = 28
W = 28
K1 = 7               # width-wise taps (unfold (7,1), pad 3)
K2 = 3               # height-wise taps (unfold (3,1), pad 1)
MID = 21             # intermediate channels
C_OUT = 256          # output channels
SHIFT = 1            # TODO(synk): deterministic stand-in for (random.random() > 0.5)*2 - 1

ROW = W + 2 * 3          # 34   : per-row padded width (3 zeros each side)
P = H * ROW              # 952  : valid flat output width
OUTW = 1024              # lane-dense output width (multiple of 128, >= P)
T5W = 1152               # stage-1 result width (>= OUTW + 2*ROW = 1092, rounded to 9*128)
ZW = T5W + (K1 - 1)      # 1158 : flat input width fed to the kernel
ZOFF = ROW + 3           # 37   : flat offset of the valid data inside the kernel input
M1 = 32                  # stage-1 output rows (21 padded to 32 -> aligned sublane stacking)
KS1 = 256                # stage-1 stacked contraction (7*32 = 224 padded to one 256 MXU pass)
KS2 = K2 * M1            # 96   : stage-2 stacked contraction (3*21 padded)
COUT_BLK = 128           # output-channel block per grid step (2 blocks total)


def _kernel(zin_ref, w2m_ref, w1m_ref, o_ref, zstk_ref, t5stk_ref):
    # zin_ref : (32, ZW)         bf16  summed + rolled + padded + flattened input
    # w2m_ref : (M1, KS1)        bf16  w2m[k, j*32 + c] = W2[c, j, k]  (zero padded)
    # w1m_ref : (COUT_BLK, KS2)  bf16  w1m[o, j*32 + k] = W1[o, j, k]  (zero padded)
    # o_ref   : (COUT_BLK, OUTW) f32   flat padded output block
    # zstk_ref: (KS1, T5W)       bf16  scratch: stacked stage-1 taps
    # t5stk_ref:(KS2, OUTW)      bf16  scratch: stacked stage-2 taps

    # ---- stage-1 operand: 7 lane-shifted copies stacked along sublanes ------
    for j in range(K1):
        zstk_ref[j * C_HALF:(j + 1) * C_HALF, :] = zin_ref[:, j:j + T5W]
    # zero the K-padding rows (uninitialized VMEM could hold NaNs; 0 * NaN != 0)
    zstk_ref[K1 * C_HALF:, :] = jnp.zeros((KS1 - K1 * C_HALF, T5W), jnp.bfloat16)

    # ---- stage 1: single bf16 MXU matmul, f32 accumulation -------------------
    t5 = jnp.dot(w2m_ref[...], zstk_ref[...],
                 preferred_element_type=jnp.float32)          # (M1, T5W) f32
    t5b = t5.astype(jnp.bfloat16)

    # ---- stage-2 operand: 3 row-shifted (j*ROW lanes) copies stacked ---------
    for j in range(K2):
        t5stk_ref[j * M1:(j + 1) * M1, :] = t5b[:, j * ROW:j * ROW + OUTW]

    # ---- stage 2: single bf16 MXU matmul per 128-channel output block --------
    o_ref[...] = jnp.dot(w1m_ref[...], t5stk_ref[...],
                         preferred_element_type=jnp.float32)  # (COUT_BLK, OUTW) f32


@jax.jit
def kernel_generated_4_forward(x, w1, w2):
    """x: (2, 32, 28, 28) f32 (== torch input viewed as (1,2,32,28,28)).
    w1: (256, 3, 21), w2: (32, 7, 21).  Returns (1, 256, 28, 28) f32."""
    # -- prologue (fuses into ~one small XLA op): sum over the split, circular
    #    roll along W, per-row zero pad, flatten, flat zero pad, cast to bf16 --
    z = x[0] + x[1]                                            # (32, 28, 28) f32
    zr = jnp.roll(z, SHIFT, axis=2)                            # circular roll along W
    zp = jnp.pad(zr, ((0, 0), (0, 0), (3, 3)))                 # (32, 28, 34)
    zf = zp.reshape(C_HALF, P)                                 # (32, 952)
    zin = jnp.pad(zf, ((0, 0), (ZOFF, ZW - ZOFF - P))).astype(jnp.bfloat16)  # (32, ZW)

    # -- tiny weight repacks (k-major stage-1 matrix, flat (j,k) stage-2 matrix)
    w2m = jnp.pad(jnp.transpose(w2, (2, 1, 0)).reshape(MID, K1 * C_HALF),
                  ((0, M1 - MID), (0, KS1 - K1 * C_HALF))).astype(jnp.bfloat16)   # (32, 256)
    w1m = jnp.pad(w1, ((0, 0), (0, 0), (0, M1 - MID))
                  ).reshape(C_OUT, KS2).astype(jnp.bfloat16)                      # (256, 96)

    out_flat = pl.pallas_call(
        _kernel,
        out_shape=jax.ShapeDtypeStruct((C_OUT, OUTW), jnp.float32),
        grid_spec=pltpu.PrefetchScalarGridSpec(
            num_scalar_prefetch=0,
            grid=(C_OUT // COUT_BLK,),
            in_specs=[
                pl.BlockSpec((C_HALF, ZW), lambda i: (0, 0)),        # full input each step
                pl.BlockSpec((M1, KS1), lambda i: (0, 0)),           # full stage-1 weights
                pl.BlockSpec((COUT_BLK, KS2), lambda i: (i, 0)),     # per-block stage-2 weights
            ],
            out_specs=pl.BlockSpec((COUT_BLK, OUTW), lambda i: (i, 0)),
            scratch_shapes=[
                pltpu.VMEM((KS1, T5W), jnp.bfloat16),
                pltpu.VMEM((KS2, OUTW), jnp.bfloat16),
            ],
        ),
        compiler_params=pltpu.CompilerParams(
            dimension_semantics=("parallel",)),
    )(zin, w2m, w1m)

    # -- epilogue: drop the 72 garbage columns and the per-row padding ---------
    out = out_flat[:, :P].reshape(C_OUT, H, ROW)[:, :, 3:3 + W]
    return out[None]                                           # (1, 256, 28, 28)


def _reference(x, w1, w2):
    """Pure-JAX reference of the torch forward (f32, highest precision)."""
    z = x.sum(0)                                               # (32,28,28)
    zr = jnp.roll(z, SHIFT, axis=2)
    zp = jnp.pad(zr, ((0, 0), (0, 0), (3, 3)))
    taps1 = jnp.stack([zp[:, :, j:j + W] for j in range(K1)], axis=1)   # (32,7,28,28)
    t5 = jnp.einsum('cjhw,cjk->hwk', taps1, w2, precision='highest')    # (28,28,21)
    t5p = jnp.pad(t5, ((1, 1), (0, 0), (0, 0)))
    taps2 = jnp.stack([t5p[j:j + H] for j in range(K2)], axis=0)        # (3,28,28,21)
    out = jnp.einsum('jhwk,ojk->ohw', taps2, w1, precision='highest')   # (256,28,28)
    return out[None]


if __name__ == "__main__":
    key = jax.random.PRNGKey(0)
    kx, k1, k2 = jax.random.split(key, 3)
    # Shapes are fixed by the module's hard-coded reshape to (1,2,32,28,28).
    x = jax.random.normal(kx, (2, C_HALF, H, W), dtype=jnp.float32)
    w1 = jax.random.normal(k1, (C_OUT, K2, MID), dtype=jnp.float32)   # weights[0]
    w2 = jax.random.normal(k2, (C_HALF, K1, MID), dtype=jnp.float32)  # weights[1]

    y = kernel_generated_4_forward(x, w1, w2)
    y = jax.block_until_ready(y)
    assert y.shape == (1, C_OUT, H, W) and y.dtype == jnp.float32

    y_ref = jax.block_until_ready(_reference(x, w1, w2))
    rel_err = float(jnp.max(jnp.abs(y - y_ref)) / (jnp.max(jnp.abs(y_ref)) + 1e-6))
    assert np.isfinite(rel_err) and rel_err < 5e-2, f"mismatch, rel_err={rel_err}"

    print("KERNEL_OK")
</pallas_src>

<mosaic_0001>
module attributes {stable_mosaic.version = 11 : i64} {
  func.func @_kernel(%arg0: i32, %arg1: memref<32x1158xbf16, #tpu.memory_space<vmem>>, %arg2: memref<32x256xbf16, #tpu.memory_space<vmem>>, %arg3: memref<128x96xbf16, #tpu.memory_space<vmem>>, %arg4: memref<128x1024xf32, #tpu.memory_space<vmem>>, %arg5: memref<256x1152xbf16, #tpu.memory_space<vmem>>, %arg6: memref<96x1024xbf16, #tpu.memory_space<vmem>>) attributes {dimension_semantics = [#tpu.dimension_semantics<parallel>], iteration_bounds = array<i64: 2>, scalar_prefetch = 0 : i64, scratch_operands = 2 : i64, tpu.core_type = #tpu.core_type<tc>, window_params = [{pipeline_mode = #tpu.pipeline_mode<synchronous>, transform_indices = @transform_0, window_bounds = array<i64: 32, 1158>}, {pipeline_mode = #tpu.pipeline_mode<synchronous>, transform_indices = @transform_1, window_bounds = array<i64: 32, 256>}, {transform_indices = @transform_2, window_bounds = array<i64: 128, 96>}, {transform_indices = @transform_3, window_bounds = array<i64: 128, 1024>}]} {
    %c0 = arith.constant 0 : index
    %c0_0 = arith.constant 0 : index
    %0 = vector.load %arg1[%c0, %c0_0] : memref<32x1158xbf16, #tpu.memory_space<vmem>>, vector<32x1152xbf16>
    %c0_1 = arith.constant 0 : index
    %c0_2 = arith.constant 0 : index
    %1 = vector.load %arg5[%c0_1, %c0_2] : memref<256x1152xbf16, #tpu.memory_space<vmem>>, vector<32x1152xbf16>
    tpu.vector_store %arg5[%c0_1, %c0_2], %0 {strides = array<i32>} : memref<256x1152xbf16, #tpu.memory_space<vmem>>, vector<32x1152xbf16>,
    %c0_3 = arith.constant 0 : index
    %c1 = arith.constant 1 : index
    %2 = vector.load %arg1[%c0_3, %c1] : memref<32x1158xbf16, #tpu.memory_space<vmem>>, vector<32x1152xbf16>
    %c32 = arith.constant 32 : index
    %c0_4 = arith.constant 0 : index
    %3 = vector.load %arg5[%c32, %c0_4] : memref<256x1152xbf16, #tpu.memory_space<vmem>>, vector<32x1152xbf16>
    tpu.vector_store %arg5[%c32, %c0_4], %2 {strides = array<i32>} : memref<256x1152xbf16, #tpu.memory_space<vmem>>, vector<32x1152xbf16>,
    %c0_5 = arith.constant 0 : index
    %c2 = arith.constant 2 : index
    %4 = vector.load %arg1[%c0_5, %c2] : memref<32x1158xbf16, #tpu.memory_space<vmem>>, vector<32x1152xbf16>
    %c64 = arith.constant 64 : index
    %c0_6 = arith.constant 0 : index
    %5 = vector.load %arg5[%c64, %c0_6] : memref<256x1152xbf16, #tpu.memory_space<vmem>>, vector<32x1152xbf16>
    tpu.vector_store %arg5[%c64, %c0_6], %4 {strides = array<i32>} : memref<256x1152xbf16, #tpu.memory_space<vmem>>, vector<32x1152xbf16>,
    %c0_7 = arith.constant 0 : index
    %c3 = arith.constant 3 : index
    %6 = vector.load %arg1[%c0_7, %c3] : memref<32x1158xbf16, #tpu.memory_space<vmem>>, vector<32x1152xbf16>
    %c96 = arith.constant 96 : index
    %c0_8 = arith.constant 0 : index
    %7 = vector.load %arg5[%c96, %c0_8] : memref<256x1152xbf16, #tpu.memory_space<vmem>>, vector<32x1152xbf16>
    tpu.vector_store %arg5[%c96, %c0_8], %6 {strides = array<i32>} : memref<256x1152xbf16, #tpu.memory_space<vmem>>, vector<32x1152xbf16>,
    %c0_9 = arith.constant 0 : index
    %c4 = arith.constant 4 : index
    %8 = vector.load %arg1[%c0_9, %c4] : memref<32x1158xbf16, #tpu.memory_space<vmem>>, vector<32x1152xbf16>
    %c128 = arith.constant 128 : index
    %c0_10 = arith.constant 0 : index
    %9 = vector.load %arg5[%c128, %c0_10] : memref<256x1152xbf16, #tpu.memory_space<vmem>>, vector<32x1152xbf16>
    tpu.vector_store %arg5[%c128, %c0_10], %8 {strides = array<i32>} : memref<256x1152xbf16, #tpu.memory_space<vmem>>, vector<32x1152xbf16>,
    %c0_11 = arith.constant 0 : index
    %c5 = arith.constant 5 : index
    %10 = vector.load %arg1[%c0_11, %c5] : memref<32x1158xbf16, #tpu.memory_space<vmem>>, vector<32x1152xbf16>
    %c160 = arith.constant 160 : index
    %c0_12 = arith.constant 0 : index
    %11 = vector.load %arg5[%c160, %c0_12] : memref<256x1152xbf16, #tpu.memory_space<vmem>>, vector<32x1152xbf16>
    tpu.vector_store %arg5[%c160, %c0_12], %10 {strides = array<i32>} : memref<256x1152xbf16, #tpu.memory_space<vmem>>, vector<32x1152xbf16>,
    %c0_13 = arith.constant 0 : index
    %c6 = arith.constant 6 : index
    %12 = vector.load %arg1[%c0_13, %c6] : memref<32x1158xbf16, #tpu.memory_space<vmem>>, vector<32x1152xbf16>
    %c192 = arith.constant 192 : index
    %c0_14 = arith.constant 0 : index
    %13 = vector.load %arg5[%c192, %c0_14] : memref<256x1152xbf16, #tpu.memory_space<vmem>>, vector<32x1152xbf16>
    tpu.vector_store %arg5[%c192, %c0_14], %12 {strides = array<i32>} : memref<256x1152xbf16, #tpu.memory_space<vmem>>, vector<32x1152xbf16>,
    %cst = arith.constant 0.000000e+00 : bf16
    %14 = vector.broadcast %cst : bf16 to vector<32x1152xbf16>
    %c224 = arith.constant 224 : index
    %c0_15 = arith.constant 0 : index
    %15 = vector.load %arg5[%c224, %c0_15] : memref<256x1152xbf16, #tpu.memory_space<vmem>>, vector<32x1152xbf16>
    tpu.vector_store %arg5[%c224, %c0_15], %14 {strides = array<i32>} : memref<256x1152xbf16, #tpu.memory_space<vmem>>, vector<32x1152xbf16>,
    %c0_16 = arith.constant 0 : index
    %c0_17 = arith.constant 0 : index
    %16 = vector.load %arg2[%c0_16, %c0_17] : memref<32x256xbf16, #tpu.memory_space<vmem>>, vector<32x256xbf16>
    %c0_18 = arith.constant 0 : index
    %c0_19 = arith.constant 0 : index
    %17 = vector.load %arg5[%c0_18, %c0_19] : memref<256x1152xbf16, #tpu.memory_space<vmem>>, vector<256x1152xbf16>
    %cst_20 = arith.constant dense<0.000000e+00> : vector<32x1152xf32>
    %18 = tpu.matmul %16, %17, %cst_20 {dimension_numbers = #tpu.dot_dimension_numbers<[1], [0], [0], [1], [0, 0, 1, 1], [], []>} : vector<32x256xbf16>, vector<256x1152xbf16>, vector<32x1152xf32> -> vector<32x1152xf32>
    %19 = arith.truncf %18 : vector<32x1152xf32> to vector<32x1152xbf16>
    %20 = vector.extract_strided_slice %19 {offsets = [0, 0], sizes = [32, 1024], strides = [1, 1]} : vector<32x1152xbf16> to vector<32x1024xbf16>
    %c0_21 = arith.constant 0 : index
    %c0_22 = arith.constant 0 : index
    %21 = vector.load %arg6[%c0_21, %c0_22] : memref<96x1024xbf16, #tpu.memory_space<vmem>>, vector<32x1024xbf16>
    tpu.vector_store %arg6[%c0_21, %c0_22], %20 {strides = array<i32>} : memref<96x1024xbf16, #tpu.memory_space<vmem>>, vector<32x1024xbf16>,
    %22 = vector.extract_strided_slice %19 {offsets = [0, 34], sizes = [32, 1024], strides = [1, 1]} : vector<32x1152xbf16> to vector<32x1024xbf16>
    %c32_23 = arith.constant 32 : index
    %c0_24 = arith.constant 0 : index
    %23 = vector.load %arg6[%c32_23, %c0_24] : memref<96x1024xbf16, #tpu.memory_space<vmem>>, vector<32x1024xbf16>
    tpu.vector_store %arg6[%c32_23, %c0_24], %22 {strides = array<i32>} : memref<96x1024xbf16, #tpu.memory_space<vmem>>, vector<32x1024xbf16>,
    %24 = vector.extract_strided_slice %19 {offsets = [0, 68], sizes = [32, 1024], strides = [1, 1]} : vector<32x1152xbf16> to vector<32x1024xbf16>
    %c64_25 = arith.constant 64 : index
    %c0_26 = arith.constant 0 : index
    %25 = vector.load %arg6[%c64_25, %c0_26] : memref<96x1024xbf16, #tpu.memory_space<vmem>>, vector<32x1024xbf16>
    tpu.vector_store %arg6[%c64_25, %c0_26], %24 {strides = array<i32>} : memref<96x1024xbf16, #tpu.memory_space<vmem>>, vector<32x1024xbf16>,
    %c0_27 = arith.constant 0 : index
    %c0_28 = arith.constant 0 : index
    %26 = vector.load %arg3[%c0_27, %c0_28] : memref<128x96xbf16, #tpu.memory_space<vmem>>, vector<128x96xbf16>
    %c0_29 = arith.constant 0 : index
    %c0_30 = arith.constant 0 : index
    %27 = vector.load %arg6[%c0_29, %c0_30] : memref<96x1024xbf16, #tpu.memory_space<vmem>>, vector<96x1024xbf16>
    %cst_31 = arith.constant dense<0.000000e+00> : vector<128x1024xf32>
    %28 = tpu.matmul %26, %27, %cst_31 {dimension_numbers = #tpu.dot_dimension_numbers<[1], [0], [0], [1], [0, 0, 1, 1], [], []>} : vector<128x96xbf16>, vector<96x1024xbf16>, vector<128x1024xf32> -> vector<128x1024xf32>
    %c0_32 = arith.constant 0 : index
    %c0_33 = arith.constant 0 : index
    %29 = vector.load %arg4[%c0_32, %c0_33] : memref<128x1024xf32, #tpu.memory_space<vmem>>, vector<128x1024xf32>
    tpu.vector_store %arg4[%c0_32, %c0_33], %28 {strides = array<i32>} : memref<128x1024xf32, #tpu.memory_space<vmem>>, vector<128x1024xf32>,
    return
  }
  func.func @transform_0(%arg0: i32) -> (i32, i32) {
    %c0_i32 = arith.constant 0 : i32
    %c0_i32_0 = arith.constant 0 : i32
    %c0_i32_1 = arith.constant 0 : i32
    return %c0_i32, %c0_i32_0 : i32, i32
  }
  func.func @transform_1(%arg0: i32) -> (i32, i32) {
    %c0_i32 = arith.constant 0 : i32
    %c0_i32_0 = arith.constant 0 : i32
    %c0_i32_1 = arith.constant 0 : i32
    return %c0_i32, %c0_i32_0 : i32, i32
  }
  func.func @transform_2(%arg0: i32) -> (i32, i32) {
    %c0_i32 = arith.constant 0 : i32
    %c0_i32_0 = arith.constant 0 : i32
    return %arg0, %c0_i32 : i32, i32
  }
  func.func @transform_3(%arg0: i32) -> (i32, i32) {
    %c0_i32 = arith.constant 0 : i32
    %c0_i32_0 = arith.constant 0 : i32
    return %arg0, %c0_i32 : i32, i32
  }
}

</mosaic_0001>

<bundles_post_ra>
// kernel: kernel_generated_4_forward.1
= control target key start
LH: loop header
LB: loop body
LE: loop exit
PB: predicated region body
PF: predicated region fallthrough
CT: control target
= control target key end

     0   :  { %s4313_s12 = smov 0   ;;  %s6370_s0 = inlined_call_operand.vmem [shape: bf16[32,1158], index: 0, kind: input, shape index: {}]   ;;  %s6371_s1 = inlined_call_operand.vmem [shape: bf16[32,256], index: 1, kind: input, shape index: {}]   ;;  %s6372_s2 = inlined_call_operand.vmem [shape: bf16[256,96], index: 2, kind: input, shape index: {}]   ;;  %s6373_s3 = inlined_call_operand.vmem [shape: f32[256,1024], index: 3, kind: output, shape index: {}]  }
   0x1 LB: > { %s3862_s13 = sadd.s32 4294967295, %s4282_s12   ;;  %p3866_p0 = scmp.ge.s32.totalorder %s4282_s12, 1  ;;  %s4282_s12 = sphi %s4313_s12, %s13_s12  }
   0x2   : > { %p138_p1 = scmp.lt.s32.totalorder %s4282_s12, 3 }
   0x4   : > { %p139_p2 = pnand %p3866_p0, %p138_p1 }
   0x5   : > { %s4284_s18 = smov (!%p139_p2), 125   ;;  %s4285_s4 = smov (!%p139_p2), 126  }
   0x6   : > { %142 = sbr.rel (%p139_p2) target bundleno = 1007 (0x3ef), region = 32  ;;  %s4286_s5 = smov (!%p139_p2), 127  }
   0x7   : > { %s4288_s16 = smov (!%p139_p2), 122   ;;  %s4289_s17 = smov (!%p139_p2), 123  }
   0x8   : > { %s4290_s19 = smov (!%p139_p2), 124   ;;  %s4291_s15 = smov (!%p139_p2), 60  }
   0x9   : > { %s4292_s20 = smov (!%p139_p2), 94   ;;  %s3867_s21 = sshll.u32 (!%p139_p2), %s3862_s13, 4 }
   0xa   : > { %p164_p3 = scmp.lt.s32.totalorder (!%p139_p2), %s3867_s21, 31 }
   0xb   : > { %v4324_v0 = vld [vmem:[%s6370_s0 + $0x78] sm:$0xff]  ;;  %v4329_v1 = vld [vmem:[%s6370_s0 + $0x50] sm:$0xff]  ;;  %v4338_v2 = vld [vmem:[%s6370_s0 + $0x80] sm:$0xff]  ;;  %v4287_v10 = vmov 0   ;;  %vm673_vm0 = vcmask 1022976   ;;  %vm317_vm1 = vcmask 1043456  }
   0xc   : > { %642 = vrot.lane.b32.xlu1 %v4324_v0, %s4284_s18  ;;  %632 = vrot.lane.b32.xlu0 %v4329_v1, %s4284_s18  ;;  %v4343_v3 = vld [vmem:[%s6370_s0 + $0x58] sm:$0xff]  ;;  %v4348_v4 = vld [vmem:[%s6370_s0] sm:$0xff]  ;;  %1290 = vst [vmem:[#allocation2 + $0x438] sm:$0xff] %v4287_v10  ;;  %1284 = vst [vmem:[#allocation2 + $0x410] sm:$0xf] %v4287_v10  ;;  %vm496_vm2 = vcmask 1031168  }
   0xd   : > { %v4353_v5 = vld [vmem:[%s6370_s0 + $0x28] sm:$0xff]  ;;  %v4371_v7 = vld [vmem:[%s6370_s0 + $0x30] sm:$0xff]  ;;  %v4417_v9 = vld [vmem:[%s6370_s0 + $0x60] sm:$0xff]  ;;  %1289 = vst [vmem:[#allocation2 + $0x434] sm:$0xf] %v4287_v10  ;;  %vm319_vm3 = vcmask 1039360  }
   0xe   : > { %v4362_v6 = vld [vmem:[%s6370_s0 + $0x8] sm:$0xff]  ;;  %1294 = vst [vmem:[#allocation2 + $0x458] sm:$0xf] %v4287_v10  ;;  %1299 = vst [vmem:[#allocation2 + $0x47c] sm:$0xf] %v4287_v10  ;;  %v4431_v11 = vld [vmem:[%s6370_s0 + $0x38] sm:$0xff] }
   0xf   : > { %v4412_v8 = vld [vmem:[%s6370_s0 + $0x88] sm:$0xff]  ;;  %v4436_v12 = vld [vmem:[%s6370_s0 + $0x10] sm:$0xff]  ;;  %v4497_v13 = vld [vmem:[%s6370_s0 + $0x58] sm:$0xff]  ;;  %vm1204_vm4 = vcmask 998400   ;;  %vm1027_vm5 = vcmask 1006592   ;;  %vm850_vm6 = vcmask 1014784  }
  0x10   : > { %644 = vrot.lane.b32.xlu1 %v4338_v2, %s4284_s18  ;;  %634 = vrot.lane.b32.xlu0 %v4343_v3, %s4284_s18  ;;  %v4502_v14 = vld [vmem:[%s6370_s0 + $0x80] sm:$0xff]  ;;  %v4515_v17 = vld [vmem:[%s6370_s0 + $0x8] sm:$0xff]  ;;  %s6434_s21 = smov (!%p164_p3, %s3867_s21), 31  ;;  %vm2791_vm7 = vcmask 490496   ;;  %vm2666_vm8 = vcmask 769024   ;;  %vm3199_vm9 = vcmask 785408  }
  0x11   : > { %v3888_v15 = vcombine.high %v4497_v13, %v4502_v14  ;;  %v3887_v16 = vcombine.low %v4497_v13, %v4502_v14  ;;  %v4520_v18 = vld [vmem:[%s6370_s0 + $0x30] sm:$0xff]  ;;  %v4525_v19 = vld [vmem:[%s6371_s1 + $0x4] ss:$8 sps:$4 sm:$0xff]   ;;  %v4575_v35 = vld [vmem:[%s6370_s0 + $0x18] sm:$0xff]  ;;  %s4130_s13 = sshll.u32 %s6434_s21, 6 }
  0x12   : > { %v3879_v20 = vcombine.high %v4515_v17, %v4520_v18  ;;  %v3878_v21 = vcombine.low %v4515_v17, %v4520_v18  ;;  %2252 = vmatprep.mubr.bf16.mxu0 %v4525_v19  ;;  %2305 = vmatprep.mubr.bf16.mxu1 %v4525_v19  ;;  %v4544_v24 = vld [vmem:[%s6370_s0 + $0x90] sm:$0xff]  ;;  %v4549_v25 = vld [vmem:[%s6370_s0 + $0x68] sm:$0xff]  ;;  %v4570_v34 = vld [vmem:[%s6370_s0 + $0x40] sm:$0xff] }
  0x14   : > { %614 = vrot.lane.b32.xlu1 %v4362_v6, %s4284_s18  ;;  %612 = vrot.lane.b32.xlu0 %v4348_v4, %s4284_s18 }
  0x18   : > { %624 = vrot.lane.b32.xlu1 %v4371_v7, %s4284_s18  ;;  %622 = vrot.lane.b32.xlu0 %v4353_v5, %s4284_s18 }
  0x1c   : > { %457 = vrot.lane.b32.xlu1 %v4343_v3, %s4285_s4  ;;  %455 = vrot.lane.b32.xlu0 %v4329_v1, %s4285_s4 }
  0x20   : > { %467 = vrot.lane.b32.xlu1 %v4338_v2, %s4285_s4  ;;  %465 = vrot.lane.b32.xlu0 %v4324_v0, %s4285_s4 }
  0x24   : > { %437 = vrot.lane.b32.xlu1 %v4362_v6, %s4285_s4  ;;  %435 = vrot.lane.b32.xlu0 %v4348_v4, %s4285_s4 }
  0x28   : > { %447 = vrot.lane.b32.xlu1 %v4371_v7, %s4285_s4  ;;  %445 = vrot.lane.b32.xlu0 %v4353_v5, %s4285_s4 }
  0x2c   : > { %279 = vrot.lane.b32.xlu1 %v4343_v3, %s4286_s5  ;;  %277 = vrot.lane.b32.xlu0 %v4329_v1, %s4286_s5 }
  0x30   : > { %289 = vrot.lane.b32.xlu1 %v4338_v2, %s4286_s5  ;;  %287 = vrot.lane.b32.xlu0 %v4324_v0, %s4286_s5 }
  0x34   : > { %259 = vrot.lane.b32.xlu1 %v4362_v6, %s4286_s5  ;;  %257 = vrot.lane.b32.xlu0 %v4348_v4, %s4286_s5 }
  0x38   : > { %269 = vrot.lane.b32.xlu1 %v4371_v7, %s4286_s5  ;;  %267 = vrot.lane.b32.xlu0 %v4353_v5, %s4286_s5 }
  0x3c   : > { %646 = vrot.lane.b32.xlu1 %v4412_v8, %s4284_s18  ;;  %636 = vrot.lane.b32.xlu0 %v4417_v9, %s4284_s18 }
  0x40   : > { %626 = vrot.lane.b32.xlu1 %v4431_v11, %s4284_s18  ;;  %616 = vrot.lane.b32.xlu0 %v4436_v12, %s4284_s18 }
  0x44   : > { %469 = vrot.lane.b32.xlu1 %v4412_v8, %s4285_s4  ;;  %459 = vrot.lane.b32.xlu0 %v4417_v9, %s4285_s4 }
  0x48   : > { %1165 = vrot.lane.b32.xlu1 %v4343_v3, %s4288_s16  ;;  %1163 = vrot.lane.b32.xlu0 %v4329_v1, %s4288_s16 }
  0x4c   : > { %1175 = vrot.lane.b32.xlu1 %v4338_v2, %s4288_s16  ;;  %1173 = vrot.lane.b32.xlu0 %v4324_v0, %s4288_s16 }
  0x50   : > { %449 = vrot.lane.b32.xlu1 %v4431_v11, %s4285_s4  ;;  %439 = vrot.lane.b32.xlu0 %v4436_v12, %s4285_s4 }
  0x54   : > { %1145 = vrot.lane.b32.xlu1 %v4362_v6, %s4288_s16  ;;  %1143 = vrot.lane.b32.xlu0 %v4348_v4, %s4288_s16 }
  0x58   : > { %1155 = vrot.lane.b32.xlu1 %v4371_v7, %s4288_s16  ;;  %1153 = vrot.lane.b32.xlu0 %v4353_v5, %s4288_s16 }
  0x5c   : > { %291 = vrot.lane.b32.xlu1 %v4412_v8, %s4286_s5  ;;  %281 = vrot.lane.b32.xlu0 %v4417_v9, %s4286_s5 }
  0x60   : > { %988 = vrot.lane.b32.xlu1 %v4343_v3, %s4289_s17  ;;  %986 = vrot.lane.b32.xlu0 %v4329_v1, %s4289_s17 }
  0x64   : > { %998 = vrot.lane.b32.xlu1 %v4338_v2, %s4289_s17  ;;  %996 = vrot.lane.b32.xlu0 %v4324_v0, %s4289_s17 }
  0x68   : > { %271 = vrot.lane.b32.xlu1 %v4431_v11, %s4286_s5  ;;  %261 = vrot.lane.b32.xlu0 %v4436_v12, %s4286_s5 }
  0x6c   : > { %968 = vrot.lane.b32.xlu1 %v4362_v6, %s4289_s17  ;;  %966 = vrot.lane.b32.xlu0 %v4348_v4, %s4289_s17 }
  0x70   : > { %978 = vrot.lane.b32.xlu1 %v4371_v7, %s4289_s17  ;;  %976 = vrot.lane.b32.xlu0 %v4353_v5, %s4289_s17 }
  0x74   : > { %811 = vrot.lane.b32.xlu1 %v4343_v3, %s4290_s19  ;;  %809 = vrot.lane.b32.xlu0 %v4329_v1, %s4290_s19 }
  0x78   : > { %821 = vrot.lane.b32.xlu1 %v4338_v2, %s4290_s19  ;;  %819 = vrot.lane.b32.xlu0 %v4324_v0, %s4290_s19 }
  0x7c   : > { %791 = vrot.lane.b32.xlu1 %v4362_v6, %s4290_s19  ;;  %789 = vrot.lane.b32.xlu0 %v4348_v4, %s4290_s19 }
  0x7e   : > { %v643_v22 = vpop.permute.xlu1 %642  ;;  %v633_v23 = vpop.permute.xlu0 %632 }
  0x7f   : > { %v667_v28 = vrot.slane %v643_v22, 4  ;;  %v662_v29 = vrot.slane %v633_v23, 4 }
  0x80   : > { %801 = vrot.lane.b32.xlu1 %v4371_v7, %s4290_s19  ;;  %799 = vrot.lane.b32.xlu0 %v4353_v5, %s4290_s19 }
  0x82   : > { %v4551_v26 = vpop.permute.xlu1 %644  ;;  %v4553_v27 = vpop.permute.xlu0 %634 }
  0x83   : > { %v668_v30 = vrot.slane %v4551_v26, 4  ;;  %v663_v31 = vrot.slane %v4553_v27, 4 }
  0x84   : > { %648 = vrot.lane.b32.xlu1 %v4544_v24, %s4284_s18  ;;  %638 = vrot.lane.b32.xlu0 %v4549_v25, %s4284_s18 }
  0x85   : > { %v700_v32 = vsel %vm317_vm1, %v667_v28, %v668_v30  ;;  %v691_v33 = vsel %vm317_vm1, %v662_v29, %v663_v31 }
  0x86   : > { %v701_v36 = vsel %vm673_vm0, %v643_v22, %v700_v32  ;;  %v692_v37 = vsel %vm673_vm0, %v633_v23, %v691_v33  ;;  %v4579_v38 = vpop.permute.xlu1 %614  ;;  %v613_v39 = vpop.permute.xlu0 %612 }
  0x87   : > { %v653_v40 = vrot.slane %v4579_v38, 4  ;;  %v652_v41 = vrot.slane %v613_v39, 4  ;;  %v3940_v42 = vcombine.high %v692_v37, %v701_v36  ;;  %v3939_v43 = vcombine.low %v692_v37, %v701_v36 }
  0x88   : > { %628 = vrot.lane.b32.xlu1 %v4570_v34, %s4284_s18  ;;  %618 = vrot.lane.b32.xlu0 %v4575_v35, %s4284_s18 }
  0x89   : > { %v672_v44 = vsel %vm317_vm1, %v652_v41, %v653_v40  ;;  %2220 = vmatprep.subr.bf16.mxu0 %v3940_v42 }
  0x8a   : > { %v674_v45 = vsel %vm673_vm0, %v613_v39, %v672_v44  ;;  %v4590_v46 = vpop.permute.xlu1 %624  ;;  %v623_v47 = vpop.permute.xlu0 %622  ;;  %2221 = vmatpush1.bf16.msra.mxu0 %v3939_v43 }
  0x8b   : > { %v658_v48 = vrot.slane %v4590_v46, 4  ;;  %v657_v49 = vrot.slane %v623_v47, 4 }
  0x8c   : > { %471 = vrot.lane.b32.xlu1 %v4544_v24, %s4285_s4  ;;  %461 = vrot.lane.b32.xlu0 %v4549_v25, %s4285_s4 }
  0x8d   : > { %v682_v50 = vsel %vm317_vm1, %v657_v49, %v658_v48 }
  0x8e   : > { %v683_v51 = vsel %vm673_vm0, %v623_v47, %v682_v50  ;;  %v4601_v52 = vpop.permute.xlu1 %457  ;;  %v456_v53 = vpop.permute.xlu0 %455 }
  0x8f   : > { %v486_v54 = vrot.slane %v4601_v52, 4  ;;  %v485_v55 = vrot.slane %v456_v53, 4  ;;  %v3931_v56 = vcombine.high %v674_v45, %v683_v51  ;;  %v3930_v57 = vcombine.low %v674_v45, %v683_v51 }
  0x90   : > { %1177 = vrot.lane.b32.xlu1 %v4412_v8, %s4288_s16  ;;  %1167 = vrot.lane.b32.xlu0 %v4417_v9, %s4288_s16 }
  0x91   : > { %v514_v58 = vsel %vm317_vm1, %v485_v55, %v486_v54  ;;  %2222 = vmatprep.subr.bf16.mxu0 %v3931_v56 }
  0x92   : > { %v515_v59 = vsel %vm496_vm2, %v456_v53, %v514_v58  ;;  %v4612_v60 = vpop.permute.xlu1 %467  ;;  %v466_v61 = vpop.permute.xlu0 %465  ;;  %2223 = vmatpush1.bf16.msra.mxu0 %v3930_v57 }
  0x93   : > { %v491_v62 = vrot.slane %v4612_v60, 4  ;;  %v490_v63 = vrot.slane %v466_v61, 4 }
  0x94   : > { %451 = vrot.lane.b32.xlu1 %v4570_v34, %s4285_s4  ;;  %441 = vrot.lane.b32.xlu0 %v4575_v35, %s4285_s4 }
  0x95   : > { %v523_v2 = vsel %vm317_vm1, %v490_v63, %v491_v62 }
  0x96   : > { %v524_v3 = vsel %vm496_vm2, %v466_v61, %v523_v2  ;;  %v4623_v6 = vpop.permute.xlu1 %437  ;;  %v436_v7 = vpop.permute.xlu0 %435 }
  0x97   : > { %v476_v22 = vrot.slane %v4623_v6, 4  ;;  %v475_v23 = vrot.slane %v436_v7, 4  ;;  %v3922_v28 = vcombine.high %v515_v59, %v524_v3  ;;  %v3921_v29 = vcombine.low %v515_v59, %v524_v3 }
  0x98   : > { %1157 = vrot.lane.b32.xlu1 %v4431_v11, %s4288_s16  ;;  %1147 = vrot.lane.b32.xlu0 %v4436_v12, %s4288_s16 }
  0x99   : > { %v495_v32 = vsel %vm317_vm1, %v475_v23, %v476_v22  ;;  %2224 = vmatprep.subr.bf16.mxu0 %v3922_v28  ;;  %v4677_v23 = vld [vmem:[%s6370_s0 + $0x88] sm:$0xff] }
  0x9a   : > { %v497_v33 = vsel %vm496_vm2, %v436_v7, %v495_v32  ;;  %v4634_v36 = vpop.permute.xlu1 %447  ;;  %v446_v37 = vpop.permute.xlu0 %445  ;;  %2225 = vmatpush1.bf16.msra.mxu0 %v3921_v29  ;;  %v4672_v7 = vld [vmem:[%s6370_s0 + $0x60] sm:$0xff] }
  0x9b   : > { %v481_v39 = vrot.slane %v4634_v36, 4  ;;  %v480_v41 = vrot.slane %v446_v37, 4 }
  0x9c   : > { %293 = vrot.lane.b32.xlu1 %v4544_v24, %s4286_s5  ;;  %283 = vrot.lane.b32.xlu0 %v4549_v25, %s4286_s5 }
  0x9d   : > { %v505_v42 = vsel %vm317_vm1, %v480_v41, %v481_v39 }
  0x9e   : > { %v506_v43 = vsel %vm496_vm2, %v446_v37, %v505_v42  ;;  %v4645_v44 = vpop.permute.xlu1 %279  ;;  %v278_v45 = vpop.permute.xlu0 %277 }
  0x9f   : > { %v308_v47 = vrot.slane %v4645_v44, 4  ;;  %v307_v49 = vrot.slane %v278_v45, 4  ;;  %v3913_v50 = vcombine.high %v497_v33, %v506_v43  ;;  %v3912_v51 = vcombine.low %v497_v33, %v506_v43 }
  0xa0   : > { %1000 = vrot.lane.b32.xlu1 %v4412_v8, %s4289_s17  ;;  %990 = vrot.lane.b32.xlu0 %v4417_v9, %s4289_s17 }
  0xa1   : > { %v337_v53 = vsel %vm317_vm1, %v307_v49, %v308_v47  ;;  %2226 = vmatprep.subr.bf16.mxu0 %v3913_v50  ;;  %v4697_v50 = vld [vmem:[%s6370_s0 + $0x10] sm:$0xff] }
  0xa2   : > { %v338_v55 = vsel %vm319_vm3, %v278_v45, %v337_v53  ;;  %v4656_v56 = vpop.permute.xlu1 %289  ;;  %v288_v57 = vpop.permute.xlu0 %287  ;;  %2227 = vmatpush1.bf16.msra.mxu0 %v3912_v51  ;;  %v4702_v51 = vld [vmem:[%s6370_s0 + $0x38] sm:$0xff] }
  0xa3   : > { %v313_v58 = vrot.slane %v4656_v56, 4  ;;  %v312_v59 = vrot.slane %v288_v57, 4 }
  0xa4   : > { %273 = vrot.lane.b32.xlu1 %v4570_v34, %s4286_s5  ;;  %263 = vrot.lane.b32.xlu0 %v4575_v35, %s4286_s5 }
  0xa5   : > { %v346_v61 = vsel %vm317_vm1, %v312_v59, %v313_v58  ;;  %v3877_v59 = vcombine.high %v4348_v4, %v4353_v5 }
  0xa6   : > { %v347_v63 = vsel %vm319_vm3, %v288_v57, %v346_v61  ;;  %v4667_v2 = vpop.permute.xlu1 %259  ;;  %v258_v3 = vpop.permute.xlu0 %257 }
  0xa7   : > { %v298_v28 = vrot.slane %v4667_v2, 4  ;;  %v297_v29 = vrot.slane %v258_v3, 4  ;;  %v3904_v32 = vcombine.high %v338_v55, %v347_v63  ;;  %v3903_v33 = vcombine.low %v338_v55, %v347_v63 }
  0xa8   : > { %980 = vrot.lane.b32.xlu1 %v4431_v11, %s4289_s17  ;;  %970 = vrot.lane.b32.xlu0 %v4436_v12, %s4289_s17 }
  0xa9   : > { %v318_v42 = vsel %vm317_vm1, %v297_v29, %v298_v28  ;;  %2228 = vmatprep.subr.bf16.mxu0 %v3904_v32  ;;  %v3886_v32 = vcombine.high %v4329_v1, %v4324_v0 }
  0xaa   : > { %v320_v43 = vsel %vm319_vm3, %v258_v3, %v318_v42  ;;  %v4692_v45 = vpop.permute.xlu1 %269  ;;  %v268_v49 = vpop.permute.xlu0 %267  ;;  %2229 = vmatpush1.bf16.msra.mxu0 %v3903_v33 }
  0xab   : > { %v303_v53 = vrot.slane %v4692_v45, 4  ;;  %v302_v55 = vrot.slane %v268_v49, 4 }
  0xac   : > { %823 = vrot.lane.b32.xlu1 %v4412_v8, %s4290_s19  ;;  %813 = vrot.lane.b32.xlu0 %v4417_v9, %s4290_s19 }
  0xad   : > { %v328_v61 = vsel %vm317_vm1, %v302_v55, %v303_v53 }
  0xae   : > { %v329_v63 = vsel %vm319_vm3, %v268_v49, %v328_v61  ;;  %v4717_v3 = vpop.permute.xlu1 %646  ;;  %v4719_v29 = vpop.permute.xlu0 %636 }
  0xaf   : > { %v669_v8 = vrot.slane %v4717_v3, 4  ;;  %v664_v9 = vrot.slane %v4719_v29, 4  ;;  %v3895_v33 = vcombine.high %v320_v43, %v329_v63  ;;  %v3894_v42 = vcombine.low %v320_v43, %v329_v63  ;;  %v4742_v43 = vld [vmem:[%s6370_s0 + $0x98] sm:$0xff] }
  0xb0   : > { %803 = vrot.lane.b32.xlu1 %v4431_v11, %s4290_s19  ;;  %793 = vrot.lane.b32.xlu0 %v4436_v12, %s4290_s19  ;;  %v4747_v11 = vld [vmem:[%s6370_s0 + $0x70] sm:$0xff]  ;;  %v3885_v63 = vcombine.low %v4329_v1, %v4324_v0 }
  0xb1   : > { %v702_v49 = vsel %vm317_vm1, %v668_v30, %v669_v8  ;;  %v693_v55 = vsel %vm317_vm1, %v663_v31, %v664_v9  ;;  %2230 = vmatprep.subr.bf16.mxu0 %v3895_v33 }
  0xb2   : > { %v703_v12 = vsel %vm673_vm0, %v4551_v26, %v702_v49  ;;  %v694_v30 = vsel %vm673_vm0, %v4553_v27, %v693_v55  ;;  %v4753_v61 = vpop.permute.xlu1 %626  ;;  %v4755_v31 = vpop.permute.xlu0 %616  ;;  %2231 = vmatpush1.bf16.msra.mxu0 %v3894_v42  ;;  %v4780_v27 = vld [vmem:[%s6370_s0 + $0x48] sm:$0xff] }
  0xb3   : > { %v659_v57 = vrot.slane %v4753_v61, 4  ;;  %v654_v33 = vrot.slane %v4755_v31, 4  ;;  %2232 = vmatprep.subr.bf16.mxu0 %v3886_v32  ;;  %v3942_v26 = vcombine.high %v694_v30, %v703_v12  ;;  %v3941_v49 = vcombine.low %v694_v30, %v703_v12  ;;  %v4785_v32 = vld [vmem:[%s6370_s0 + $0x20] sm:$0xff] }
  0xb4   : > { %650 = vrot.lane.b32.xlu1 %v4742_v43, %s4284_s18  ;;  %640 = vrot.lane.b32.xlu0 %v4747_v11, %s4284_s18  ;;  %v4799_v30 = vcombine.high %v4287_v10, %v4287_v10 }
  0xb5   : > { %v684_v0 = vsel %vm317_vm1, %v658_v48, %v659_v57  ;;  %v675_v1 = vsel %vm317_vm1, %v653_v40, %v654_v33  ;;  %2273 = vmatprep.subr.bf16.mxu1 %v3942_v26  ;;  %v3876_v48 = vcombine.low %v4348_v4, %v4353_v5 }
  0xb6   : > { %v685_v42 = vsel %vm673_vm0, %v4590_v46, %v684_v0  ;;  %v676_v40 = vsel %vm673_vm0, %v4579_v38, %v675_v1  ;;  %v4793_v55 = vpop.permute.xlu1 %469  ;;  %v4795_v12 = vpop.permute.xlu0 %459  ;;  %2274 = vmatpush1.bf16.msra.mxu1 %v3941_v49  ;;  %2233 = vmatpush1.bf16.msra.mxu0 %v3885_v63 }
  0xb7   : > { %v492_v26 = vrot.slane %v4793_v55, 4  ;;  %v6381_v4 = vrot.slane %v4795_v12, 4  ;;  %2234 = vmatprep.subr.bf16.mxu0 %v3877_v59  ;;  %v3933_v5 = vcombine.high %v676_v40, %v685_v42  ;;  %v3932_v46 = vcombine.low %v676_v40, %v685_v42 }
  0xb8   : > { %630 = vrot.lane.b32.xlu1 %v4780_v27, %s4284_s18  ;;  %620 = vrot.lane.b32.xlu0 %v4785_v32, %s4284_s18 }
  0xb9   : > { %v525_v38 = vsel %vm317_vm1, %v491_v62, %v492_v26  ;;  %v516_v59 = vsel %vm317_vm1, %v486_v54, %v6381_v4  ;;  %2275 = vmatprep.subr.bf16.mxu1 %v3933_v5  ;;  %v4825_v62 = vcombine.low %v4287_v10, %v4287_v10 }
  0xba   : > { %v526_v63 = vsel %vm496_vm2, %v4612_v60, %v525_v38  ;;  %v517_v49 = vsel %vm496_vm2, %v4601_v52, %v516_v59  ;;  %v4821_v0 = vpop.permute.xlu1 %1165  ;;  %v1164_v1 = vpop.permute.xlu0 %1163  ;;  %2276 = vmatpush1.bf16.msra.mxu1 %v3932_v46  ;;  %2235 = vmatpush1.bf16.msra.mxu0 %v3876_v48 }
  0xbb   : > { %v6375_v42 = vrot.slane %v4821_v0, 4  ;;  %v1193_v54 = vrot.slane %v1164_v1, 4  ;;  %2236 = vmatprep.subr.bf16.mxu0 %v4799_v30  ;;  %v3924_v40 = vcombine.high %v517_v49, %v526_v63  ;;  %v3923_v60 = vcombine.low %v517_v49, %v526_v63 }
  0xbc   : > { %473 = vrot.lane.b32.xlu1 %v4742_v43, %s4285_s4  ;;  %463 = vrot.lane.b32.xlu0 %v4747_v11, %s4285_s4 }
  0xbd   : > { %v1222_v52 = vsel %vm317_vm1, %v1193_v54, %v6375_v42  ;;  %2277 = vmatprep.subr.bf16.mxu1 %v3924_v40 }
  0xbe   : > { %v1223_v10 = vsel %vm1204_vm4, %v1164_v1, %v1222_v52  ;;  %v4837_v48 = vpop.permute.xlu1 %1175  ;;  %v1174_v5 = vpop.permute.xlu0 %1173  ;;  %2278 = vmatpush1.bf16.msra.mxu1 %v3923_v60  ;;  %2237 = vmatpush2.bf16.msra.mxu0 %v4825_v62 }
  0xbf   : > { %v6380_v46 = vrot.slane %v4837_v48, 4  ;;  %v1198_v38 = vrot.slane %v1174_v5, 4  ;;  %2238 = vmatprep.subr.bf16.mxu0 %v4799_v30 }
  0xc0   : > { %1179 = vrot.lane.b32.xlu1 %v4544_v24, %s4288_s16  ;;  %1169 = vrot.lane.b32.xlu0 %v4549_v25, %s4288_s16 }
  0xc1   : > { %v1231_v59 = vsel %vm317_vm1, %v1198_v38, %v6380_v46 }
  0xc2   : > { %v1232_v63 = vsel %vm1204_vm4, %v1174_v5, %v1231_v59  ;;  %v4850_v49 = vpop.permute.xlu1 %449  ;;  %v4852_v1 = vpop.permute.xlu0 %439  ;;  %2239 = vmatpush2.bf16.msra.mxu0 %v4825_v62 }
  0xc3   : > { %v6374_v54 = vrot.slane %v4850_v49, 4  ;;  %v6378_v40 = vrot.slane %v4852_v1, 4  ;;  %v3994_v60 = vcombine.high %v1223_v10, %v1232_v63  ;;  %v3993_v52 = vcombine.low %v1223_v10, %v1232_v63 }
  0xc4   : > { %453 = vrot.lane.b32.xlu1 %v4780_v27, %s4285_s4  ;;  %443 = vrot.lane.b32.xlu0 %v4785_v32, %s4285_s4 }
  0xc5   : > { %v507_v5 = vsel %vm317_vm1, %v481_v39, %v6374_v54  ;;  %v498_v38 = vsel %vm317_vm1, %v476_v22, %v6378_v40  ;;  %2240 = vmatprep.subr.bf16.mxu0 %v3994_v60 }
  0xc6   : > { %v508_v10 = vsel %vm496_vm2, %v4634_v36, %v507_v5  ;;  %v499_v59 = vsel %vm496_vm2, %v4623_v6, %v498_v38  ;;  %v4875_v63 = vpop.permute.xlu1 %1145  ;;  %v1144_v37 = vpop.permute.xlu0 %1143  ;;  %2241 = vmatpush2.bf16.msra.mxu0 %v3993_v52 }
  0xc7   : > { %v6376_v41 = vrot.slane %v4875_v63, 4  ;;  %v1183_v39 = vrot.slane %v1144_v37, 4  ;;  %v3915_v54 = vcombine.high %v499_v59, %v508_v10  ;;  %v3914_v42 = vcombine.low %v499_v59, %v508_v10 }
  0xc8   : > { %1159 = vrot.lane.b32.xlu1 %v4570_v34, %s4288_s16  ;;  %1149 = vrot.lane.b32.xlu0 %v4575_v35, %s4288_s16 }
  0xc9   : > { %v1203_v22 = vsel %vm317_vm1, %v1183_v39, %v6376_v41  ;;  %2279 = vmatprep.subr.bf16.mxu1 %v3915_v54  ;;  %v4906_v41 = vld [vmem:[%s6370_s0 + $0x68] sm:$0xff] }
  0xca   : > { %v1205_v6 = vsel %vm1204_vm4, %v1144_v37, %v1203_v22  ;;  %v4886_v36 = vpop.permute.xlu1 %1155  ;;  %v1154_v60 = vpop.permute.xlu0 %1153  ;;  %2280 = vmatpush1.bf16.msra.mxu1 %v3914_v42 }
  0xcb   : > { %v6377_v52 = vrot.slane %v4886_v36, 4  ;;  %v1188_v5 = vrot.slane %v1154_v60, 4 }
  0xcc   : > { %295 = vrot.lane.b32.xlu1 %v4742_v43, %s4286_s5  ;;  %285 = vrot.lane.b32.xlu0 %v4747_v11, %s4286_s5 }
  0xcd   : > { %v1213_v38 = vsel %vm317_vm1, %v1188_v5, %v6377_v52  ;;  %v4911_v5 = vld [vmem:[%s6370_s0 + $0x90] sm:$0xff] }
  0xce   : > { %v1214_v54 = vsel %vm1204_vm4, %v1154_v60, %v1213_v38  ;;  %v4897_v37 = vpop.permute.xlu1 %291  ;;  %v4899_v10 = vpop.permute.xlu0 %281 }
  0xcf   : > { %v6379_v42 = vrot.slane %v4897_v37, 4  ;;  %v6382_v59 = vrot.slane %v4899_v10, 4  ;;  %v3985_v39 = vcombine.high %v1205_v6, %v1214_v54  ;;  %v3984_v22 = vcombine.low %v1205_v6, %v1214_v54 }
  0xd0   : > { %1002 = vrot.lane.b32.xlu1 %v4544_v24, %s4289_s17  ;;  %992 = vrot.lane.b32.xlu0 %v4549_v25, %s4289_s17 }
  0xd1   : > { %v348_v6 = vsel %vm317_vm1, %v313_v58, %v6379_v42  ;;  %v339_v38 = vsel %vm317_vm1, %v308_v47, %v6382_v59  ;;  %2242 = vmatprep.subr.bf16.mxu0 %v3985_v39  ;;  %v4941_v39 = vld [vmem:[%s6370_s0 + $0x18] sm:$0xff] }
  0xd2   : > { %v349_v52 = vsel %vm319_vm3, %v4656_v56, %v348_v6  ;;  %v340_v60 = vsel %vm319_vm3, %v4645_v44, %v339_v38  ;;  %v4935_v40 = vpop.permute.xlu1 %988  ;;  %v987_v58 = vpop.permute.xlu0 %986  ;;  %2243 = vmatpush2.bf16.msra.mxu0 %v3984_v22  ;;  %v4946_v56 = vld [vmem:[%s6370_s0 + $0x40] sm:$0xff] }
  0xd3   : > { %v6383_v42 = vrot.slane %v4935_v40, 4  ;;  %v1016_v46 = vrot.slane %v987_v58, 4  ;;  %v3906_v4 = vcombine.high %v340_v60, %v349_v52  ;;  %v3905_v47 = vcombine.low %v340_v60, %v349_v52 }
  0xd4   : > { %275 = vrot.lane.b32.xlu1 %v4780_v27, %s4286_s5  ;;  %265 = vrot.lane.b32.xlu0 %v4785_v32, %s4286_s5  ;;  %s3868_s5 = sshll.u32 %s6434_s21, 2 }
  0xd5   : > { %v1045_v52 = vsel %vm317_vm1, %v1016_v46, %v6383_v42  ;;  %2281 = vmatprep.subr.bf16.mxu1 %v3906_v4  ;;  %s5768_s22 = scalar_lea.vmem %s6372_s2, %s3868_s5 }
  0xd6   : > { %v1046_v60 = vsel %vm1027_vm5, %v987_v58, %v1045_v52  ;;  %v4960_v6 = vpop.permute.xlu1 %998  ;;  %v997_v38 = vpop.permute.xlu0 %996  ;;  %2282 = vmatpush1.bf16.msra.mxu1 %v3905_v47 }
  0xd7   : > { %v6385_v54 = vrot.slane %v4960_v6, 4  ;;  %v1021_v59 = vrot.slane %v997_v38, 4 }
  0xd8   : > { %982 = vrot.lane.b32.xlu1 %v4570_v34, %s4289_s17  ;;  %972 = vrot.lane.b32.xlu0 %v4575_v35, %s4289_s17 }
  0xd9   : > { %v1054_v4 = vsel %vm317_vm1, %v1021_v59, %v6385_v54 }
  0xda   : > { %v1055_v46 = vsel %vm1027_vm5, %v997_v38, %v1054_v4  ;;  %v4971_v58 = vpop.permute.xlu1 %271  ;;  %v4973_v52 = vpop.permute.xlu0 %261 }
  0xdb   : > { %v6384_v47 = vrot.slane %v4971_v58, 4  ;;  %v299_v22 = vrot.slane %v4973_v52, 4  ;;  %v3976_v44 = vcombine.high %v1046_v60, %v1055_v46  ;;  %v3975_v42 = vcombine.low %v1046_v60, %v1055_v46 }
  0xdc   : > { %825 = vrot.lane.b32.xlu1 %v4544_v24, %s4290_s19  ;;  %815 = vrot.lane.b32.xlu0 %v4549_v25, %s4290_s19 }
  0xdd   : > { %v330_v59 = vsel %vm317_vm1, %v303_v53, %v6384_v47  ;;  %v321_v38 = vsel %vm317_vm1, %v298_v28, %v299_v22  ;;  %2244 = vmatprep.subr.bf16.mxu0 %v3976_v44 }
  0xde   : > { %v331_v60 = vsel %vm319_vm3, %v4692_v45, %v330_v59  ;;  %v322_v24 = vsel %vm319_vm3, %v4667_v2, %v321_v38  ;;  %v4995_v25 = vpop.permute.xlu1 %968  ;;  %v967_v4 = vpop.permute.xlu0 %966  ;;  %2245 = vmatpush2.bf16.msra.mxu0 %v3975_v42 }
  0xdf   : > { %v1007_v46 = vrot.slane %v4995_v25, 4  ;;  %v1006_v53 = vrot.slane %v967_v4, 4  ;;  %v3897_v47 = vcombine.high %v322_v24, %v331_v60  ;;  %v3896_v54 = vcombine.low %v322_v24, %v331_v60 }
  0xe0   : > { %805 = vrot.lane.b32.xlu1 %v4570_v34, %s4290_s19  ;;  %795 = vrot.lane.b32.xlu0 %v4575_v35, %s4290_s19 }
  0xe1   : > { %v1026_v28 = vsel %vm317_vm1, %v1006_v53, %v1007_v46  ;;  %2283 = vmatprep.subr.bf16.mxu1 %v3897_v47 }
  0xe2   : > { %v1028_v2 = vsel %vm1027_vm5, %v967_v4, %v1026_v28  ;;  %v5006_v45 = vpop.permute.xlu1 %978  ;;  %v977_v42 = vpop.permute.xlu0 %976  ;;  %2284 = vmatpush1.bf16.msra.mxu1 %v3896_v54 }
  0xe3   : > { %v1012_v44 = vrot.slane %v5006_v45, 4  ;;  %v1011_v59 = vrot.slane %v977_v42, 4  ;;  %2285 = vmatprep.subr.bf16.mxu1 %v3888_v15 }
  0xe4   : > { %1181 = vrot.lane.b32.xlu1 %v4742_v43, %s4288_s16  ;;  %1171 = vrot.lane.b32.xlu0 %v4747_v11, %s4288_s16 }
  0xe5   : > { %v1036_v34 = vsel %vm317_vm1, %v1011_v59, %v1012_v44 }
  0xe6   : > { %v1037_v35 = vsel %vm1027_vm5, %v977_v42, %v1036_v34  ;;  %v5020_v54 = vpop.permute.xlu1 %811  ;;  %v810_v47 = vpop.permute.xlu0 %809  ;;  %2286 = vmatpush1.bf16.msra.mxu1 %v3887_v16 }
  0xe7   : > { %v840_v15 = vrot.slane %v5020_v54, 4  ;;  %v839_v38 = vrot.slane %v810_v47, 4  ;;  %v3967_v60 = vcombine.high %v1028_v2, %v1037_v35  ;;  %v3966_v24 = vcombine.low %v1028_v2, %v1037_v35  ;;  %2287 = vmatprep.subr.bf16.mxu1 %v3879_v20 }
  0xe8   : > { %1161 = vrot.lane.b32.xlu1 %v4780_v27, %s4288_s16  ;;  %1151 = vrot.lane.b32.xlu0 %v4785_v32, %s4288_s16 }
  0xe9   : > { %v868_v13 = vsel %vm317_vm1, %v839_v38, %v840_v15  ;;  %2246 = vmatprep.subr.bf16.mxu0 %v3967_v60 }
  0xea   : > { %v869_v14 = vsel %vm850_vm6, %v810_v47, %v868_v13  ;;  %v5037_v16 = vpop.permute.xlu1 %821  ;;  %v820_v4 = vpop.permute.xlu0 %819  ;;  %2247 = vmatpush2.bf16.msra.mxu0 %v3966_v24  ;;  %2288 = vmatpush1.bf16.msra.mxu1 %v3878_v21  ;;  %v191_v13 = vld [vmem:[%s6370_s0 + $0x70] sm:$0xf] }
  0xeb   : > { %v845_v20 = vrot.slane %v5037_v16, 4  ;;  %v844_v53 = vrot.slane %v820_v4, 4  ;;  %2289 = vmatprep.subr.bf16.mxu1 %v4799_v30  ;;  %211 = vst [vmem:[#allocation2 + $0x68] sm:$0xf] %v191_v13 }
  0xec   : > { %1004 = vrot.lane.b32.xlu1 %v4742_v43, %s4289_s17  ;;  %994 = vrot.lane.b32.xlu0 %v4747_v11, %s4289_s17 }
  0xed   : > { %v877_v28 = vsel %vm317_vm1, %v844_v53, %v845_v20 }
  0xee   : > { %v878_v2 = vsel %vm850_vm6, %v820_v4, %v877_v28  ;;  %v5052_v42 = vpop.permute.xlu1 %791  ;;  %v790_v17 = vpop.permute.xlu0 %789  ;;  %2290 = vmatpush2.bf16.msra.mxu1 %v4825_v62 }
  0xef   : > { %v830_v18 = vrot.slane %v5052_v42, 4  ;;  %v829_v21 = vrot.slane %v790_v17, 4  ;;  %v3958_v59 = vcombine.high %v869_v14, %v878_v2  ;;  %v3957_v34 = vcombine.low %v869_v14, %v878_v2  ;;  %2291 = vmatprep.subr.bf16.mxu1 %v4799_v30  ;;  %v196_v14 = vld [vmem:[%s6370_s0 + $0x98] sm:$0xf] }
  0xf0   : > { %984 = vrot.lane.b32.xlu1 %v4780_v27, %s4289_s17  ;;  %974 = vrot.lane.b32.xlu0 %v4785_v32, %s4289_s17  ;;  %216 = vst [vmem:[#allocation2 + $0x8c] sm:$0xf] %v196_v14 }
  0xf1   : > { %v849_v35 = vsel %vm317_vm1, %v829_v21, %v830_v18  ;;  %2248 = vmatprep.subr.bf16.mxu0 %v3958_v59 }
  0xf2   : > { %v851_v47 = vsel %vm850_vm6, %v790_v17, %v849_v35  ;;  %v5065_v38 = vpop.permute.xlu1 %801  ;;  %v800_v60 = vpop.permute.xlu0 %799  ;;  %2249 = vmatpush2.bf16.msra.mxu0 %v3957_v34  ;;  %2292 = vmatpush2.bf16.msra.mxu1 %v4825_v62 }
  0xf3   : > { %v835_v30 = vrot.slane %v5065_v38, 4  ;;  %v834_v24 = vrot.slane %v800_v60, 4 }
  0xf4   : > { %827 = vrot.lane.b32.xlu1 %v4742_v43, %s4290_s19  ;;  %817 = vrot.lane.b32.xlu0 %v4747_v11, %s4290_s19 }
  0xf5   : > { %v859_v62 = vsel %vm317_vm1, %v834_v24, %v835_v30 }
  0xf6   : > { %v860_v4 = vsel %vm850_vm6, %v800_v60, %v859_v62  ;;  %v5083_v53 = vpop.permute.xlu1 %648  ;;  %v5085_v28 = vpop.permute.xlu0 %638 }
  0xf7   : > { %v670_v2 = vrot.slane %v5083_v53, 4  ;;  %v665_v17 = vrot.slane %v5085_v28, 4  ;;  %v3949_v43 = vcombine.high %v851_v47, %v860_v4  ;;  %v3948_v21 = vcombine.low %v851_v47, %v860_v4 }
  0xf8   : > { %807 = vrot.lane.b32.xlu1 %v4780_v27, %s4290_s19  ;;  %797 = vrot.lane.b32.xlu0 %v4785_v32, %s4290_s19  ;;  %v5106_v27 = vld [vmem:[%s6371_s1] ss:$8 sps:$4 sm:$0xff]   ;;  %s6237_s19 = scalar_lea.vmem %s6373_s3, %s4130_s13 }
  0xf9   : > { %v704_v11 = vsel %vm317_vm1, %v669_v8, %v670_v2  ;;  %v695_v59 = vsel %vm317_vm1, %v664_v9, %v665_v17  ;;  %2250 = vmatprep.subr.bf16.mxu0 %v3949_v43  ;;  %v5119_v9 = vld [vmem:[%s6371_s1 + $0x14] ss:$8 sps:$4 sm:$0xff]  }
  0xfa   : > { %v705_v32 = vsel %vm673_vm0, %v4717_v3, %v704_v11  ;;  %v696_v34 = vsel %vm673_vm0, %v4719_v29, %v695_v59  ;;  %v5112_v35 = vpop.permute.xlu1 %628  ;;  %v5114_v8 = vpop.permute.xlu0 %618  ;;  %2251 = vmatpush2.bf16.msra.mxu0 %v3948_v21  ;;  %v181_v3 = vld [vmem:[%s6370_s0 + $0x20] sm:$0xf]  ;;  %v186_v29 = vld [vmem:[%s6370_s0 + $0x48] sm:$0xf] }
  0xfb   : > { %v660_v47 = vrot.slane %v5112_v35, 4  ;;  %v655_v60 = vrot.slane %v5114_v8, 4  ;;  %v3943_v24 = vcombine.low %v696_v34, %v705_v32  ;;  %v3944_v13 = vcombine.high %v696_v34, %v705_v32  ;;  %201 = vst [vmem:[#allocation2 + $0x20] sm:$0xf] %v181_v3  ;;  %206 = vst [vmem:[#allocation2 + $0x44] sm:$0xf] %v186_v29 }
  0xfd   : > { %v686_v14 = vsel %vm317_vm1, %v659_v57, %v660_v47  ;;  %v677_v62 = vsel %vm317_vm1, %v654_v33, %v655_v60  ;;  %2326 = vmatprep.subr.bf16.mxu0 %v3944_v13  ;;  %2253 = vmatmul.mubr.bf16.vlgmr.msra.gmra.mxu0 %v5106_v27 }
  0xfe   : > { %v687_v4 = vsel %vm673_vm0, %v4753_v61, %v686_v14  ;;  %v678_v43 = vsel %vm673_vm0, %v4755_v31, %v677_v62  ;;  %v5144_v21 = vpop.permute.xlu1 %471  ;;  %v5146_v57 = vpop.permute.xlu0 %461  ;;  %2327 = vmatpush1.bf16.msra.mxu0 %v3943_v24  ;;  %2262 = vmatprep.mubr.bf16.mxu0 %v5119_v9  ;;  %v6396_v31 = vrot.slane %v4795_v12, 4  ;;  %v5164_v24 = vld [vmem:[%s6371_s1 + $0x10] ss:$8 sps:$4 sm:$0xff]  }
  0xff   : > { %v493_v33 = vrot.slane %v5144_v21, 4  ;;  %v488_v11 = vrot.slane %v5146_v57, 4  ;;  %v3934_v59 = vcombine.low %v678_v43, %v687_v4  ;;  %v3935_v32 = vcombine.high %v678_v43, %v687_v4 }
 0x101   : > { %v527_v61 = vsel %vm317_vm1, %v492_v26, %v493_v33  ;;  %v518_v34 = vsel %vm317_vm1, %v6396_v31, %v488_v11  ;;  %2328 = vmatprep.subr.bf16.mxu0 %v3935_v32  ;;  %v6397_v32 = vrot.slane %v4837_v48, 4 }
 0x102   : > { %v528_v13 = vsel %vm496_vm2, %v4793_v55, %v527_v61  ;;  %v519_v3 = vsel %vm496_vm2, %v4795_v12, %v518_v34  ;;  %v5170_v29 = vpop.permute.xlu1 %1177  ;;  %v5172_v26 = vpop.permute.xlu0 %1167  ;;  %2329 = vmatpush1.bf16.msra.mxu0 %v3934_v59  ;;  %v6398_v12 = vrot.slane %v4821_v0, 4 }
 0x103   : > { %v6388_v14 = vrot.slane %v5170_v29, 4  ;;  %v6387_v62 = vrot.slane %v5172_v26, 4  ;;  %v3925_v4 = vcombine.low %v519_v3, %v528_v13  ;;  %v3926_v43 = vcombine.high %v519_v3, %v528_v13 }
 0x105   : > { %v1233_v55 = vsel %vm317_vm1, %v6397_v32, %v6388_v14  ;;  %v1224_v61 = vsel %vm317_vm1, %v6398_v12, %v6387_v62  ;;  %2330 = vmatprep.subr.bf16.mxu0 %v3926_v43  ;;  %2263 = vmatmul.mubr.bf16.gmra.mxu0 %v5164_v24 }
 0x106   : > { %v1234_v59 = vsel %vm1204_vm4, %v4837_v48, %v1233_v55  ;;  %v1225_v31 = vsel %vm1204_vm4, %v4821_v0, %v1224_v61  ;;  %v5191_v34 = vpop.permute.xlu1 %451  ;;  %v5193_v13 = vpop.permute.xlu0 %441  ;;  %2331 = vmatpush1.bf16.msra.mxu0 %v3925_v4  ;;  %2358 = vmatprep.mubr.bf16.mxu0 %v4525_v19  ;;  %v6399_v48 = vrot.slane %v4850_v49, 4  ;;  %v6400_v0 = vrot.slane %v4852_v1, 4 }
 0x107   : > { %v6386_v3 = vrot.slane %v5191_v34, 4  ;;  %v6390_v32 = vrot.slane %v5193_v13, 4  ;;  %v3996_v43 = vcombine.high %v1225_v31, %v1234_v59  ;;  %v3995_v12 = vcombine.low %v1225_v31, %v1234_v59 }
 0x109   : > { %v509_v55 = vsel %vm317_vm1, %v6399_v48, %v6386_v3  ;;  %v500_v4 = vsel %vm317_vm1, %v6400_v0, %v6390_v32  ;;  %2293 = vmatprep.subr.bf16.mxu1 %v3996_v43  ;;  %v6401_v43 = vrot.slane %v4886_v36, 4 }
 0x10a   : > { %v510_v19 = vsel %vm496_vm2, %v4850_v49, %v509_v55  ;;  %v501_v61 = vsel %vm496_vm2, %v4852_v1, %v500_v4  ;;  %v5212_v59 = vpop.permute.xlu1 %1157  ;;  %v5214_v31 = vpop.permute.xlu0 %1147  ;;  %2294 = vmatpush2.bf16.msra.mxu1 %v3995_v12  ;;  %v6402_v1 = vrot.slane %v4875_v63, 4 }
 0x10b   : > { %v6389_v48 = vrot.slane %v5212_v59, 4  ;;  %v6392_v3 = vrot.slane %v5214_v31, 4  ;;  %v3916_v62 = vcombine.low %v501_v61, %v510_v19  ;;  %v3917_v14 = vcombine.high %v501_v61, %v510_v19 }
 0x10d   : > { %v1215_v49 = vsel %vm317_vm1, %v6401_v43, %v6389_v48  ;;  %v1206_v55 = vsel %vm317_vm1, %v6402_v1, %v6392_v3  ;;  %2332 = vmatprep.subr.bf16.mxu0 %v3917_v14  ;;  %v6403_v14 = vrot.slane %v4897_v37, 4 }
 0x10e   : > { %v1216_v12 = vsel %vm1204_vm4, %v4886_v36, %v1215_v49  ;;  %v1207_v0 = vsel %vm1204_vm4, %v4875_v63, %v1206_v55  ;;  %v5232_v4 = vpop.permute.xlu1 %293  ;;  %v5234_v19 = vpop.permute.xlu0 %283  ;;  %2333 = vmatpush1.bf16.msra.mxu0 %v3916_v62  ;;  %v6404_v63 = vrot.slane %v4899_v10, 4 }
 0x10f   : > { %v6391_v61 = vrot.slane %v5232_v4, 4  ;;  %v6394_v43 = vrot.slane %v5234_v19, 4  ;;  %v3987_v48 = vcombine.high %v1207_v0, %v1216_v12  ;;  %v3986_v32 = vcombine.low %v1207_v0, %v1216_v12 }
 0x111   : > { %v350_v36 = vsel %vm317_vm1, %v6403_v14, %v6391_v61  ;;  %v341_v49 = vsel %vm317_vm1, %v6404_v63, %v6394_v43  ;;  %2295 = vmatprep.subr.bf16.mxu1 %v3987_v48  ;;  %v6405_v48 = vrot.slane %v4960_v6, 4 }
 0x112   : > { %v351_v62 = vsel %vm319_vm3, %v4897_v37, %v350_v36  ;;  %v342_v1 = vsel %vm319_vm3, %v4899_v10, %v341_v49  ;;  %v5252_v55 = vpop.permute.xlu1 %1000  ;;  %v5254_v12 = vpop.permute.xlu0 %990  ;;  %2296 = vmatpush2.bf16.msra.mxu1 %v3986_v32  ;;  %v6406_v10 = vrot.slane %v4935_v40, 4 }
 0x113   : > { %v6393_v0 = vrot.slane %v5252_v55, 4  ;;  %v1018_v14 = vrot.slane %v5254_v12, 4  ;;  %v3907_v61 = vcombine.low %v342_v1, %v351_v62  ;;  %v3908_v3 = vcombine.high %v342_v1, %v351_v62 }
 0x115   : > { %v1056_v37 = vsel %vm317_vm1, %v6405_v48, %v6393_v0  ;;  %v1047_v36 = vsel %vm317_vm1, %v6406_v10, %v1018_v14  ;;  %2334 = vmatprep.subr.bf16.mxu0 %v3908_v3  ;;  %v6407_v3 = vrot.slane %v4971_v58, 4 }
 0x116   : > { %v1057_v32 = vsel %vm1027_vm5, %v4960_v6, %v1056_v37  ;;  %v1048_v63 = vsel %vm1027_vm5, %v4935_v40, %v1047_v36  ;;  %v5272_v49 = vpop.permute.xlu1 %273  ;;  %v5274_v62 = vpop.permute.xlu0 %263  ;;  %2335 = vmatpush1.bf16.msra.mxu0 %v3907_v61 }
 0x117   : > { %v6395_v1 = vrot.slane %v5272_v49, 4  ;;  %v300_v48 = vrot.slane %v5274_v62, 4  ;;  %v3978_v0 = vcombine.high %v1048_v63, %v1057_v32  ;;  %v3977_v43 = vcombine.low %v1048_v63, %v1057_v32 }
 0x119   : > { %v332_v6 = vsel %vm317_vm1, %v6407_v3, %v6395_v1  ;;  %v323_v40 = vsel %vm317_vm1, %v299_v22, %v300_v48  ;;  %2297 = vmatprep.subr.bf16.mxu1 %v3978_v0 }
 0x11a   : > { %v333_v61 = vsel %vm319_vm3, %v4971_v58, %v332_v6  ;;  %v324_v37 = vsel %vm319_vm3, %v4973_v52, %v323_v40  ;;  %v5292_v10 = vpop.permute.xlu1 %980  ;;  %v5294_v36 = vpop.permute.xlu0 %970  ;;  %2298 = vmatpush2.bf16.msra.mxu1 %v3977_v43 }
 0x11b   : > { %v1013_v32 = vrot.slane %v5292_v10, 4  ;;  %v1008_v63 = vrot.slane %v5294_v36, 4  ;;  %v3898_v3 = vcombine.low %v324_v37, %v333_v61  ;;  %v3899_v1 = vcombine.high %v324_v37, %v333_v61 }
 0x11d   : > { %v1038_v22 = vsel %vm317_vm1, %v1012_v44, %v1013_v32  ;;  %v1029_v58 = vsel %vm317_vm1, %v1007_v46, %v1008_v63  ;;  %2336 = vmatprep.subr.bf16.mxu0 %v3899_v1  ;;  %v6408_v46 = vcombine.high %v4672_v7, %v4677_v23 }
 0x11e   : > { %v1039_v52 = vsel %vm1027_vm5, %v5006_v45, %v1038_v22  ;;  %v1030_v43 = vsel %vm1027_vm5, %v4995_v25, %v1029_v58  ;;  %v5312_v0 = vpop.permute.xlu1 %823  ;;  %v5314_v6 = vpop.permute.xlu0 %813  ;;  %2337 = vmatpush1.bf16.msra.mxu0 %v3898_v3 }
 0x11f   : > { %v846_v44 = vrot.slane %v5312_v0, 4  ;;  %v841_v40 = vrot.slane %v5314_v6, 4  ;;  %v3969_v61 = vcombine.high %v1030_v43, %v1039_v52  ;;  %v3968_v37 = vcombine.low %v1030_v43, %v1039_v52  ;;  %2338 = vmatprep.subr.bf16.mxu0 %v6408_v46  ;;  %v5342_v52 = vld [vmem:[#allocation2 + $0x438] sm:$0xff] }
 0x120   : > { %v6410_v46 = vcombine.high %v4697_v50, %v4702_v51 }
 0x121   : > { %v879_v25 = vsel %vm317_vm1, %v845_v20, %v846_v44  ;;  %v870_v45 = vsel %vm317_vm1, %v840_v15, %v841_v40  ;;  %2299 = vmatprep.subr.bf16.mxu1 %v3969_v61  ;;  %v6409_v20 = vcombine.low %v4672_v7, %v4677_v23  ;;  %v5346_v15 = vcombine.high %v5342_v52, %v5342_v52 }
 0x122   : > { %v880_v1 = vsel %vm850_vm6, %v5037_v16, %v879_v25  ;;  %v871_v3 = vsel %vm850_vm6, %v5020_v54, %v870_v45  ;;  %v5335_v22 = vpop.permute.xlu1 %803  ;;  %v5337_v58 = vpop.permute.xlu0 %793  ;;  %2300 = vmatpush2.bf16.msra.mxu1 %v3968_v37 }
 0x123   : > { %2339 = vmatpush1.bf16.msra.mxu0 %v6409_v20  ;;  %v836_v16 = vrot.slane %v5335_v22, 4  ;;  %v831_v43 = vrot.slane %v5337_v58, 4  ;;  %v3960_v54 = vcombine.high %v871_v3, %v880_v1  ;;  %v3959_v61 = vcombine.low %v871_v3, %v880_v1 }
 0x124   : > { %2340 = vmatprep.subr.bf16.mxu0 %v6410_v46  ;;  %v6411_v3 = vcombine.low %v4697_v50, %v4702_v51 }
 0x125   : > { %v861_v7 = vsel %vm317_vm1, %v835_v30, %v836_v16  ;;  %v852_v23 = vsel %vm317_vm1, %v830_v18, %v831_v43  ;;  %2301 = vmatprep.subr.bf16.mxu1 %v3960_v54  ;;  %v5372_v30 = vcombine.low %v5342_v52, %v5342_v52 }
 0x126   : > { %v862_v37 = vsel %vm850_vm6, %v5065_v38, %v861_v7  ;;  %v853_v25 = vsel %vm850_vm6, %v5052_v42, %v852_v23  ;;  %v651_v45 = vpop.permute.xlu1 %650  ;;  %v641_v1 = vpop.permute.xlu0 %640  ;;  %2302 = vmatpush2.bf16.msra.mxu1 %v3959_v61 }
 0x127   : > { %2341 = vmatpush1.bf16.msra.mxu0 %v6411_v3  ;;  %v671_v20 = vrot.slane %v651_v45, 4  ;;  %v666_v18 = vrot.slane %v641_v1, 4  ;;  %v3951_v54 = vcombine.high %v853_v25, %v862_v37  ;;  %v3950_v46 = vcombine.low %v853_v25, %v862_v37 }
 0x128   : > { %2342 = vmatprep.subr.bf16.mxu0 %v5346_v15 }
 0x129   : > { %v706_v42 = vsel %vm317_vm1, %v670_v2, %v671_v20  ;;  %v708_v38 = vsel %vm673_vm0, %v651_v45, %v671_v20  ;;  %v697_v50 = vsel %vm317_vm1, %v665_v17, %v666_v18  ;;  %v699_v51 = vsel %vm673_vm0, %v641_v1, %v666_v18  ;;  %2303 = vmatprep.subr.bf16.mxu1 %v3951_v54 }
 0x12a   : > { %v707_v61 = vsel %vm673_vm0, %v5083_v53, %v706_v42  ;;  %748 = vst [vmem:[#allocation2 + $0x23c] sm:$0xf] %v708_v38  ;;  %v698_v7 = vsel %vm673_vm0, %v5085_v28, %v697_v50  ;;  %743 = vst [vmem:[#allocation2 + $0x218] sm:$0xf] %v699_v51  ;;  %v631_v23 = vpop.permute.xlu1 %630  ;;  %v621_v37 = vpop.permute.xlu0 %620  ;;  %2304 = vmatpush2.bf16.msra.mxu1 %v3950_v46 }
 0x12b   : > { %2343 = vmatpush2.bf16.msra.mxu0 %v5372_v30  ;;  %v661_v2 = vrot.slane %v631_v23, 4  ;;  %v656_v25 = vrot.slane %v621_v37, 4  ;;  %v3945_v45 = vcombine.low %v698_v7, %v707_v61  ;;  %v3946_v17 = vcombine.high %v698_v7, %v707_v61 }
 0x12c   : > { %2344 = vmatprep.subr.bf16.mxu0 %v5346_v15 }
 0x12d   : > { %v688_v53 = vsel %vm317_vm1, %v660_v47, %v661_v2  ;;  %v690_v1 = vsel %vm673_vm0, %v631_v23, %v661_v2  ;;  %v679_v28 = vsel %vm317_vm1, %v655_v60, %v656_v25  ;;  %v681_v3 = vsel %vm673_vm0, %v621_v37, %v656_v25  ;;  %2306 = vmatmul.mubr.bf16.vlgmr.msra.gmra.mxu1 %v5106_v27 }
 0x12e   : > { %v689_v20 = vsel %vm673_vm0, %v5112_v35, %v688_v53  ;;  %738 = vst [vmem:[#allocation2 + $0x1f4] sm:$0xf] %v690_v1  ;;  %v680_v18 = vsel %vm673_vm0, %v5114_v8, %v679_v28  ;;  %733 = vst [vmem:[#allocation2 + $0x1d0] sm:$0xf] %v681_v3  ;;  %v474_v54 = vpop.permute.xlu1 %473  ;;  %v464_v47 = vpop.permute.xlu0 %463  ;;  %2379 = vmatprep.subr.bf16.mxu1 %v3946_v17  ;;  %2315 = vmatprep.mubr.bf16.mxu1 %v5119_v9 }
 0x12f   : > { %v494_v46 = vrot.slane %v474_v54, 4  ;;  %v489_v42 = vrot.slane %v464_v47, 4  ;;  %2380 = vmatpush1.bf16.msra.mxu1 %v3945_v45  ;;  %v3936_v60 = vcombine.low %v680_v18, %v689_v20  ;;  %v3937_v38 = vcombine.high %v680_v18, %v689_v20  ;;  %2345 = vmatpush2.bf16.msra.mxu0 %v5372_v30  ;;  %v5440_v20 = vld [vmem:[%s6371_s1 + $0x4] ss:$8 sps:$4 sm:$0xff]  }
 0x131   : > { %v529_v35 = vsel %vm317_vm1, %v493_v33, %v494_v46  ;;  %v531_v50 = vsel %vm496_vm2, %v474_v54, %v494_v46  ;;  %v520_v8 = vsel %vm317_vm1, %v488_v11, %v489_v42  ;;  %v522_v51 = vsel %vm496_vm2, %v464_v47, %v489_v42  ;;  %2381 = vmatprep.subr.bf16.mxu1 %v3937_v38 }
 0x132   : > { %v530_v61 = vsel %vm496_vm2, %v5144_v21, %v529_v35  ;;  %571 = vst [vmem:[#allocation2 + $0x1ac] sm:$0xf] %v531_v50  ;;  %v521_v7 = vsel %vm496_vm2, %v5146_v57, %v520_v8  ;;  %566 = vst [vmem:[#allocation2 + $0x188] sm:$0xf] %v522_v51  ;;  %v5416_v23 = vpop.permute.xlu1 %1179  ;;  %v5418_v33 = vpop.permute.xlu0 %1169  ;;  %v6412_v21 = vrot.slane %v5170_v29, 4  ;;  %v6413_v57 = vrot.slane %v5172_v26, 4 }
 0x133   : > { %v1201_v37 = vrot.slane %v5416_v23, 4  ;;  %v1196_v2 = vrot.slane %v5418_v33, 4  ;;  %2382 = vmatpush1.bf16.msra.mxu1 %v3936_v60  ;;  %v3927_v11 = vcombine.low %v521_v7, %v530_v61  ;;  %v3928_v25 = vcombine.high %v521_v7, %v530_v61 }
 0x134   : > { %v6414_v42 = vrot.slane %v5191_v34, 4  ;;  %v6415_v60 = vrot.slane %v5193_v13, 4 }
 0x135   : > { %v1235_v45 = vsel %vm317_vm1, %v6412_v21, %v1201_v37  ;;  %v1226_v17 = vsel %vm317_vm1, %v6413_v57, %v1196_v2  ;;  %2316 = vmatmul.mubr.bf16.gmra.mxu1 %v5164_v24  ;;  %2383 = vmatprep.subr.bf16.mxu1 %v3928_v25 }
 0x136   : > { %v1236_v53 = vsel %vm1204_vm4, %v5170_v29, %v1235_v45  ;;  %v1227_v1 = vsel %vm1204_vm4, %v5172_v26, %v1226_v17  ;;  %v454_v28 = vpop.permute.xlu1 %453  ;;  %v444_v3 = vpop.permute.xlu0 %443  ;;  %2411 = vmatprep.mubr.bf16.mxu1 %v5440_v20 }
 0x137   : > { %v484_v18 = vrot.slane %v454_v28, 4  ;;  %v479_v54 = vrot.slane %v444_v3, 4  ;;  %2384 = vmatpush1.bf16.msra.mxu1 %v3927_v11  ;;  %v3997_v47 = vcombine.low %v1227_v1, %v1236_v53  ;;  %v3998_v46 = vcombine.high %v1227_v1, %v1236_v53 }
 0x139   : > { %v511_v29 = vsel %vm317_vm1, %v6414_v42, %v484_v18  ;;  %v513_v26 = vsel %vm496_vm2, %v454_v28, %v484_v18  ;;  %v502_v38 = vsel %vm317_vm1, %v6415_v60, %v479_v54  ;;  %v504_v35 = vsel %vm496_vm2, %v444_v3, %v479_v54  ;;  %2346 = vmatprep.subr.bf16.mxu0 %v3998_v46 }
 0x13a   : > { %v512_v50 = vsel %vm496_vm2, %v5191_v34, %v511_v29  ;;  %561 = vst [vmem:[#allocation2 + $0x164] sm:$0xf] %v513_v26  ;;  %v503_v8 = vsel %vm496_vm2, %v5193_v13, %v502_v38  ;;  %556 = vst [vmem:[#allocation2 + $0x140] sm:$0xf] %v504_v35  ;;  %v5455_v51 = vpop.permute.xlu1 %1159  ;;  %v5457_v61 = vpop.permute.xlu0 %1149  ;;  %2347 = vmatpush2.bf16.msra.mxu0 %v3997_v47  ;;  %v6416_v34 = vrot.slane %v5212_v59, 4  ;;  %v6417_v13 = vrot.slane %v5214_v31, 4 }
 0x13b   : > { %v1191_v7 = vrot.slane %v5455_v51, 4  ;;  %v1186_v11 = vrot.slane %v5457_v61, 4  ;;  %v3918_v25 = vcombine.low %v503_v8, %v512_v50  ;;  %v3919_v21 = vcombine.high %v503_v8, %v512_v50 }
 0x13c   : > { %v6418_v46 = vrot.slane %v5232_v4, 4  ;;  %v6419_v26 = vrot.slane %v5234_v19, 4 }
 0x13d   : > { %v1217_v45 = vsel %vm317_vm1, %v6416_v34, %v1191_v7  ;;  %v1208_v57 = vsel %vm317_vm1, %v6417_v13, %v1186_v11  ;;  %2385 = vmatprep.subr.bf16.mxu1 %v3919_v21 }
 0x13e   : > { %v1218_v17 = vsel %vm1204_vm4, %v5212_v59, %v1217_v45  ;;  %v1209_v53 = vsel %vm1204_vm4, %v5214_v31, %v1208_v57  ;;  %v296_v1 = vpop.permute.xlu1 %295  ;;  %v286_v28 = vpop.permute.xlu0 %285  ;;  %2386 = vmatpush1.bf16.msra.mxu1 %v3918_v25 }
 0x13f   : > { %v316_v3 = vrot.slane %v296_v1, 4  ;;  %v311_v18 = vrot.slane %v286_v28, 4  ;;  %v3988_v54 = vcombine.low %v1209_v53, %v1218_v17  ;;  %v3989_v47 = vcombine.high %v1209_v53, %v1218_v17 }
 0x141   : > { %v352_v42 = vsel %vm317_vm1, %v6418_v46, %v316_v3  ;;  %v354_v29 = vsel %vm319_vm3, %v296_v1, %v316_v3  ;;  %v343_v59 = vsel %vm317_vm1, %v6419_v26, %v311_v18  ;;  %v345_v60 = vsel %vm319_vm3, %v286_v28, %v311_v18  ;;  %2348 = vmatprep.subr.bf16.mxu0 %v3989_v47 }
 0x142   : > { %v353_v31 = vsel %vm319_vm3, %v5232_v4, %v352_v42  ;;  %394 = vst [vmem:[#allocation2 + $0x11c] sm:$0xf] %v354_v29  ;;  %v344_v38 = vsel %vm319_vm3, %v5234_v19, %v343_v59  ;;  %389 = vst [vmem:[#allocation2 + $0xf8] sm:$0xf] %v345_v60  ;;  %v5487_v35 = vpop.permute.xlu1 %1002  ;;  %v5489_v50 = vpop.permute.xlu0 %992  ;;  %2349 = vmatpush2.bf16.msra.mxu0 %v3988_v54  ;;  %v6420_v4 = vrot.slane %v5252_v55, 4  ;;  %v6421_v54 = vrot.slane %v5272_v49, 4 }
 0x143   : > { %v1024_v8 = vrot.slane %v5487_v35, 4  ;;  %v1019_v25 = vrot.slane %v5489_v50, 4  ;;  %v3909_v21 = vcombine.low %v344_v38, %v353_v31  ;;  %v3910_v34 = vcombine.high %v344_v38, %v353_v31 }
 0x145   : > { %v1058_v45 = vsel %vm317_vm1, %v6420_v4, %v1024_v8  ;;  %v1049_v19 = vsel %vm317_vm1, %v1018_v14, %v1019_v25  ;;  %2387 = vmatprep.subr.bf16.mxu1 %v3910_v34 }
 0x146   : > { %v1059_v13 = vsel %vm1027_vm5, %v5252_v55, %v1058_v45  ;;  %v1050_v57 = vsel %vm1027_vm5, %v5254_v12, %v1049_v19  ;;  %v276_v17 = vpop.permute.xlu1 %275  ;;  %v266_v53 = vpop.permute.xlu0 %265  ;;  %2388 = vmatpush1.bf16.msra.mxu1 %v3909_v21 }
 0x147   : > { %v306_v1 = vrot.slane %v276_v17, 4  ;;  %v301_v28 = vrot.slane %v266_v53, 4  ;;  %v3979_v3 = vcombine.low %v1050_v57, %v1059_v13  ;;  %v3980_v18 = vcombine.high %v1050_v57, %v1059_v13 }
 0x149   : > { %v334_v47 = vsel %vm317_vm1, %v6421_v54, %v306_v1  ;;  %v336_v14 = vsel %vm319_vm3, %v276_v17, %v306_v1  ;;  %v325_v55 = vsel %vm317_vm1, %v300_v48, %v301_v28  ;;  %v327_v46 = vsel %vm319_vm3, %v266_v53, %v301_v28  ;;  %2350 = vmatprep.subr.bf16.mxu0 %v3980_v18 }
 0x14a   : > { %v335_v12 = vsel %vm319_vm3, %v5272_v49, %v334_v47  ;;  %384 = vst [vmem:[#allocation2 + $0xd4] sm:$0xf] %v336_v14  ;;  %v326_v42 = vsel %vm319_vm3, %v5274_v62, %v325_v55  ;;  %379 = vst [vmem:[#allocation2 + $0xb0] sm:$0xf] %v327_v46  ;;  %v5519_v29 = vpop.permute.xlu1 %982  ;;  %v5521_v26 = vpop.permute.xlu0 %972  ;;  %2351 = vmatpush2.bf16.msra.mxu0 %v3979_v3  ;;  %v6425_v55 = vcombine.low %v4941_v39, %v4946_v56 }
 0x14b   : > { %v1014_v59 = vrot.slane %v5519_v29, 4  ;;  %v1009_v48 = vrot.slane %v5521_v26, 4  ;;  %v3900_v60 = vcombine.low %v326_v42, %v335_v12  ;;  %v3901_v31 = vcombine.high %v326_v42, %v335_v12 }
 0x14d   : > { %v1040_v49 = vsel %vm317_vm1, %v1013_v32, %v1014_v59  ;;  %v1031_v62 = vsel %vm317_vm1, %v1008_v63, %v1009_v48  ;;  %2389 = vmatprep.subr.bf16.mxu1 %v3901_v31  ;;  %v6422_v63 = vcombine.high %v4906_v41, %v4911_v5 }
 0x14e   : > { %v1041_v38 = vsel %vm1027_vm5, %v5292_v10, %v1040_v49  ;;  %v1032_v21 = vsel %vm1027_vm5, %v5294_v36, %v1031_v62  ;;  %v5539_v34 = vpop.permute.xlu1 %825  ;;  %v5541_v4 = vpop.permute.xlu0 %815  ;;  %2390 = vmatpush1.bf16.msra.mxu1 %v3900_v60 }
 0x14f   : > { %v847_v32 = vrot.slane %v5539_v34, 4  ;;  %v842_v45 = vrot.slane %v5541_v4, 4  ;;  %v3970_v19 = vcombine.low %v1032_v21, %v1041_v38  ;;  %v3971_v13 = vcombine.high %v1032_v21, %v1041_v38  ;;  %2391 = vmatprep.subr.bf16.mxu1 %v6422_v63  ;;  %v4247_v21 = vld [vmem:[#allocation2 + $0x218] ss:$36 sps:$4 sm:$0xff]  }
 0x151   : > { %v881_v10 = vsel %vm317_vm1, %v846_v44, %v847_v32  ;;  %v872_v36 = vsel %vm317_vm1, %v841_v40, %v842_v45  ;;  %2352 = vmatprep.subr.bf16.mxu0 %v3971_v13  ;;  %v6423_v44 = vcombine.low %v4906_v41, %v4911_v5 }
 0x152   : > { %v882_v57 = vsel %vm850_vm6, %v5312_v0, %v881_v10  ;;  %v873_v17 = vsel %vm850_vm6, %v5314_v6, %v872_v36  ;;  %v5562_v53 = vpop.permute.xlu1 %805  ;;  %v5564_v1 = vpop.permute.xlu0 %795  ;;  %2353 = vmatpush2.bf16.msra.mxu0 %v3970_v19  ;;  %v6424_v0 = vcombine.high %v4941_v39, %v4946_v56 }
 0x153   : > { %2392 = vmatpush1.bf16.msra.mxu1 %v6423_v44  ;;  %v837_v28 = vrot.slane %v5562_v53, 4  ;;  %v832_v40 = vrot.slane %v5564_v1, 4  ;;  %v3961_v3 = vcombine.low %v873_v17, %v882_v57  ;;  %v3962_v18 = vcombine.high %v873_v17, %v882_v57  ;;  %v4249_v44 = vld [vmem:[#allocation2 + $0x1d0] ss:$36 sps:$4 sm:$0xff]  }
 0x154   : > { %2393 = vmatprep.subr.bf16.mxu1 %v6424_v0 }
 0x155   : > { %v863_v6 = vsel %vm317_vm1, %v836_v16, %v837_v28  ;;  %v854_v41 = vsel %vm317_vm1, %v831_v43, %v832_v40  ;;  %2354 = vmatprep.subr.bf16.mxu0 %v3962_v18  ;;  %v4246_v43 = vld [vmem:[#allocation2 + $0x458] ss:$36 sps:$4 sm:$0xff]  }
 0x156   : > { %v864_v5 = vsel %vm850_vm6, %v5335_v22, %v863_v6  ;;  %v855_v54 = vsel %vm850_vm6, %v5337_v58, %v854_v41  ;;  %v1182_v47 = vpop.permute.xlu1 %1181  ;;  %v1172_v14 = vpop.permute.xlu0 %1171  ;;  %2355 = vmatpush2.bf16.msra.mxu0 %v3961_v3 }
 0x157   : > { %2394 = vmatpush1.bf16.msra.mxu1 %v6425_v55  ;;  %v1202_v16 = vrot.slane %v1182_v47, 4  ;;  %v1197_v46 = vrot.slane %v1172_v14, 4  ;;  %v3952_v12 = vcombine.low %v855_v54, %v864_v5  ;;  %v3953_v42 = vcombine.high %v855_v54, %v864_v5  ;;  %v4251_v54 = vld [vmem:[#allocation2 + $0x188] ss:$36 sps:$4 sm:$0xff]  }
 0x158   : > { %2395 = vmatprep.subr.bf16.mxu1 %v5346_v15 }
 0x159   : > { %v1237_v22 = vsel %vm317_vm1, %v1201_v37, %v1202_v16  ;;  %v1239_v58 = vsel %vm1204_vm4, %v1182_v47, %v1202_v16  ;;  %v1228_v60 = vsel %vm317_vm1, %v1196_v2, %v1197_v46  ;;  %v1230_v39 = vsel %vm1204_vm4, %v1172_v14, %v1197_v46  ;;  %2356 = vmatprep.subr.bf16.mxu0 %v3953_v42  ;;  %v4248_v2 = vld [vmem:[#allocation2 + $0x410] ss:$36 sps:$4 sm:$0xff]  }
 0x15a   : > { %v1238_v56 = vsel %vm1204_vm4, %v5416_v23, %v1237_v22  ;;  %1279 = vst [vmem:[#allocation2 + $0x3ec] sm:$0xf] %v1239_v58  ;;  %v1229_v31 = vsel %vm1204_vm4, %v5418_v33, %v1228_v60  ;;  %1274 = vst [vmem:[#allocation2 + $0x3c8] sm:$0xf] %v1230_v39  ;;  %v1162_v49 = vpop.permute.xlu1 %1161  ;;  %v1152_v62 = vpop.permute.xlu0 %1151  ;;  %2357 = vmatpush2.bf16.msra.mxu0 %v3952_v12  ;;  %v4253_v58 = vld [vmem:[#allocation2 + $0x140] ss:$36 sps:$4 sm:$0xff]  }
 0x15b   : > { %2396 = vmatpush2.bf16.msra.mxu1 %v5372_v30  ;;  %v1192_v37 = vrot.slane %v1162_v49, 4  ;;  %v1187_v38 = vrot.slane %v1152_v62, 4  ;;  %4167 = vmatprep.subr.bf16.mxu0 %v4246_v43  ;;  %v4000_v19 = vcombine.high %v1229_v31, %v1238_v56 }
 0x15c   : > { %2397 = vmatprep.subr.bf16.mxu1 %v5346_v15 }
 0x15d   : > { %v1219_v23 = vsel %vm317_vm1, %v1191_v7, %v1192_v37  ;;  %v1221_v33 = vsel %vm1204_vm4, %v1162_v49, %v1192_v37  ;;  %v1210_v13 = vsel %vm317_vm1, %v1186_v11, %v1187_v38  ;;  %v1212_v63 = vsel %vm1204_vm4, %v1152_v62, %v1187_v38  ;;  %2359 = vmatmul.mubr.bf16.vlgmr.msra.gmra.mxu0 %v5106_v27  ;;  %v4255_v38 = vld [vmem:[#allocation2 + $0xf8] ss:$36 sps:$4 sm:$0xff]  }
 0x15e   : > { %v1220_v15 = vsel %vm1204_vm4, %v5455_v51, %v1219_v23  ;;  %1269 = vst [vmem:[#allocation2 + $0x3a4] sm:$0xf] %v1221_v33  ;;  %v1211_v10 = vsel %vm1204_vm4, %v5457_v61, %v1210_v13  ;;  %1264 = vst [vmem:[#allocation2 + $0x380] sm:$0xf] %v1212_v63  ;;  %v1005_v36 = vpop.permute.xlu1 %1004  ;;  %v995_v7 = vpop.permute.xlu0 %994  ;;  %4168 = vmatpush3.bf16.msra.mxu0 %v4247_v21  ;;  %v3999_v11 = vcombine.low %v1229_v31, %v1238_v56  ;;  %v4257_v63 = vld [vmem:[#allocation2 + $0xb0] ss:$36 sps:$4 sm:$0xff]  }
 0x15f   : > { %2398 = vmatpush2.bf16.msra.mxu1 %v5372_v30  ;;  %v1025_v57 = vrot.slane %v1005_v36, 4  ;;  %v1020_v17 = vrot.slane %v995_v7, 4  ;;  %4169 = vmatprep.subr.bf16.mxu0 %v4248_v2  ;;  %v3991_v27 = vcombine.high %v1211_v10, %v1220_v15 }
 0x160   : > { %2399 = vmatprep.subr.bf16.mxu1 %v4000_v19  ;;  %2368 = vmatprep.mubr.bf16.mxu0 %v5119_v9 }
 0x161   : > { %v1060_v51 = vsel %vm317_vm1, %v1024_v8, %v1025_v57  ;;  %v1062_v61 = vsel %vm1027_vm5, %v1005_v36, %v1025_v57  ;;  %v1051_v30 = vsel %vm317_vm1, %v1019_v25, %v1020_v17  ;;  %v1053_v3 = vsel %vm1027_vm5, %v995_v7, %v1020_v17  ;;  %v4250_v18 = vld [vmem:[#allocation2 + $0x3c8] ss:$36 sps:$4 sm:$0xff]   ;;  %v4261_v7 = vld [vmem:[#allocation2 + $0x20] ss:$36 sps:$4 sm:$0xff]   ;;  %v4273_v57 = vld [vmem:[%s6371_s1 + $0x14] ss:$8 sps:$4 sm:$0xff]  }
 0x162   : > { %v1061_v0 = vsel %vm1027_vm5, %v5487_v35, %v1060_v51  ;;  %1102 = vst [vmem:[#allocation2 + $0x35c] sm:$0xf] %v1062_v61  ;;  %v1052_v9 = vsel %vm1027_vm5, %v5489_v50, %v1051_v30  ;;  %1097 = vst [vmem:[#allocation2 + $0x338] sm:$0xf] %v1053_v3  ;;  %v985_v6 = vpop.permute.xlu1 %984  ;;  %v975_v41 = vpop.permute.xlu0 %974  ;;  %4170 = vmatpush3.bf16.msra.mxu0 %v4249_v44  ;;  %v3990_v25 = vcombine.low %v1211_v10, %v1220_v15  ;;  %v4274_v17 = vld [vmem:[%s6371_s1 + $0x10] ss:$8 sps:$4 sm:$0xff]  }
 0x163   : > { %2400 = vmatpush2.bf16.msra.mxu1 %v3999_v11  ;;  %v1015_v8 = vrot.slane %v985_v6, 4  ;;  %v1010_v5 = vrot.slane %v975_v41, 4  ;;  %4171 = vmatprep.subr.bf16.mxu0 %v4250_v18  ;;  %v3982_v47 = vcombine.high %v1052_v9, %v1061_v0 }
 0x164   : > { %2401 = vmatprep.subr.bf16.mxu1 %v3991_v27 }
 0x165   : > { %v1042_v35 = vsel %vm317_vm1, %v1014_v59, %v1015_v8  ;;  %v1044_v14 = vsel %vm1027_vm5, %v985_v6, %v1015_v8  ;;  %v1033_v50 = vsel %vm317_vm1, %v1009_v48, %v1010_v5  ;;  %v1035_v55 = vsel %vm1027_vm5, %v975_v41, %v1010_v5  ;;  %2369 = vmatmul.mubr.bf16.gmra.mxu0 %v5164_v24  ;;  %v4252_v16 = vld [vmem:[#allocation2 + $0x380] ss:$36 sps:$4 sm:$0xff]  }
 0x166   : > { %v1043_v46 = vsel %vm1027_vm5, %v5519_v29, %v1042_v35  ;;  %1092 = vst [vmem:[#allocation2 + $0x314] sm:$0xf] %v1044_v14  ;;  %v1034_v12 = vsel %vm1027_vm5, %v5521_v26, %v1033_v50  ;;  %1087 = vst [vmem:[#allocation2 + $0x2f0] sm:$0xf] %v1035_v55  ;;  %v828_v59 = vpop.permute.xlu1 %827  ;;  %v818_v42 = vpop.permute.xlu0 %817  ;;  %4172 = vmatpush3.bf16.msra.mxu0 %v4251_v54  ;;  %v3981_v48 = vcombine.low %v1052_v9, %v1061_v0 }
 0x167   : > { %2402 = vmatpush2.bf16.msra.mxu1 %v3990_v25  ;;  %v848_v43 = vrot.slane %v828_v59, 4  ;;  %v843_v22 = vrot.slane %v818_v42, 4  ;;  %4173 = vmatprep.subr.bf16.mxu0 %v4252_v16  ;;  %v3973_v24 = vcombine.high %v1034_v12, %v1043_v46 }
 0x168   : > { %2403 = vmatprep.subr.bf16.mxu1 %v3982_v47  ;;  %2464 = vmatprep.mubr.bf16.mxu0 %v5440_v20 }
 0x169   : > { %v883_v29 = vsel %vm317_vm1, %v847_v32, %v848_v43  ;;  %v885_v26 = vsel %vm850_vm6, %v828_v59, %v848_v43  ;;  %v874_v60 = vsel %vm317_vm1, %v842_v45, %v843_v22  ;;  %v876_v39 = vsel %vm850_vm6, %v818_v42, %v843_v22  ;;  %v4254_v56 = vld [vmem:[#allocation2 + $0x338] ss:$36 sps:$4 sm:$0xff]  }
 0x16a   : > { %v884_v31 = vsel %vm850_vm6, %v5539_v34, %v883_v29  ;;  %925 = vst [vmem:[#allocation2 + $0x2cc] sm:$0xf] %v885_v26  ;;  %v875_v20 = vsel %vm850_vm6, %v5541_v4, %v874_v60  ;;  %920 = vst [vmem:[#allocation2 + $0x2a8] sm:$0xf] %v876_v39  ;;  %v808_v49 = vpop.permute.xlu1 %807  ;;  %v798_v62 = vpop.permute.xlu0 %797  ;;  %4174 = vmatpush3.bf16.msra.mxu0 %v4253_v58  ;;  %v3972_v45 = vcombine.low %v1034_v12, %v1043_v46 }
 0x16b   : > { %2404 = vmatpush2.bf16.msra.mxu1 %v3981_v48  ;;  %v838_v32 = vrot.slane %v808_v49, 4  ;;  %v833_v37 = vrot.slane %v798_v62, 4  ;;  %4175 = vmatprep.subr.bf16.mxu0 %v4254_v56  ;;  %v3964_v2 = vcombine.high %v875_v20, %v884_v31 }
 0x16c   : > { %2405 = vmatprep.subr.bf16.mxu1 %v3973_v24 }
 0x16d   : > { %v865_v34 = vsel %vm317_vm1, %v837_v28, %v838_v32  ;;  %v867_v21 = vsel %vm850_vm6, %v808_v49, %v838_v32  ;;  %v856_v4 = vsel %vm317_vm1, %v832_v40, %v833_v37  ;;  %v858_v19 = vsel %vm850_vm6, %v798_v62, %v833_v37  ;;  %v4256_v23 = vld [vmem:[#allocation2 + $0x2f0] ss:$36 sps:$4 sm:$0xff]   ;;  %v4259_v40 = vld [vmem:[#allocation2 + $0x68] ss:$36 sps:$4 sm:$0xff]  }
 0x16e   : > { %v866_v33 = vsel %vm850_vm6, %v5562_v53, %v865_v34  ;;  %915 = vst [vmem:[#allocation2 + $0x284] sm:$0xf] %v867_v21  ;;  %v857_v13 = vsel %vm850_vm6, %v5564_v1, %v856_v4  ;;  %910 = vst [vmem:[#allocation2 + $0x260] sm:$0xf] %v858_v19  ;;  %4176 = vmatpush3.bf16.msra.mxu0 %v4255_v38  ;;  %v3963_v28 = vcombine.low %v875_v20, %v884_v31  ;;  %v4272_v1 = vld [vmem:[%s6371_s1] ss:$8 sps:$4 sm:$0xff]  }
 0x16f   : > { %2406 = vmatpush2.bf16.msra.mxu1 %v3972_v45  ;;  %4177 = vmatprep.subr.bf16.mxu0 %v4256_v23  ;;  %v3955_v15 = vcombine.high %v857_v13, %v866_v33  ;;  %v3954_v36 = vcombine.low %v857_v13, %v866_v33 }
 0x170   : > { %2407 = vmatprep.subr.bf16.mxu1 %v3964_v2 }
 0x171   : > { %v4258_v10 = vld [vmem:[#allocation2 + $0x2a8] ss:$36 sps:$4 sm:$0xff]  }
 0x172   : > { %4178 = vmatpush3.bf16.msra.mxu0 %v4257_v63 }
 0x173   : > { %2408 = vmatpush2.bf16.msra.mxu1 %v3963_v28  ;;  %4179 = vmatprep.subr.bf16.mxu0 %v4258_v10 }
 0x174   : > { %2409 = vmatprep.subr.bf16.mxu1 %v3955_v15 }
 0x175   : > { %v4260_v53 = vld [vmem:[#allocation2 + $0x260] ss:$36 sps:$4 sm:$0xff]  }
 0x176   : > { %4180 = vmatpush3.bf16.msra.mxu0 %v4259_v40 }
 0x177   : > { %2410 = vmatpush2.bf16.msra.mxu1 %v3954_v36  ;;  %4181 = vmatprep.subr.bf16.mxu0 %v4260_v53 }
 0x17a   : > { %2412 = vmatmul.mubr.bf16.vlgmr.msra.gmra.mxu1 %v4272_v1  ;;  %4182 = vmatpush3.bf16.msra.mxu0 %v4261_v7 }
 0x17b   : > { %2421 = vmatprep.mubr.bf16.mxu1 %v4273_v57 }
 0x17d   : > { %2465 = vmatmul.mubr.bf16.vlgmr.msra.gmra.mxu0 %v4272_v1 }
 0x17e   : > { %2472 = vmatprep.mubr.bf16.mxu0 %v4273_v57 }
 0x182   : > { %2422 = vmatmul.mubr.bf16.gmra.mxu1 %v4274_v17 }
 0x183   : > { %3256 = vmatprep.mubr.bf16.mxu1 %v5342_v52 }
 0x185   : > { %2473 = vmatmul.mubr.bf16.gmra.mxu0 %v4274_v17 }
 0x186   : > { %3369 = vmatprep.mubr.bf16.mxu0 %v5342_v52 }
 0x1bd   : > { %v5682_v11 = vpop.f32.mrf.mxu0 }
 0x1bf   : > { %v5684_v44 = vpop.f32.mrf.mxu0 }
 0x1c0   : > { %v4131_v27 = vpack.c.bf16 %v5684_v44, %v5682_v11 }
 0x1c1   : > { %v5688_v51 = vpop.f32.mrf.mxu0 }
 0x1c2   : > { %v4151_v61 = vpack.c.bf16 %v5688_v51, %v5682_v11  ;;  %2730 = vrot.lane.b32.xlu0 %v4131_v27, %s4291_s15 }
 0x1c3   : > { %v5693_v30 = vpop.f32.mrf.mxu0 }
 0x1c4   : > { %v4135_v52 = vpack.c.bf16 %v5693_v30, %v5688_v51  ;;  %v4152_v3 = vpack.c.bf16 %v5693_v30, %v5684_v44  ;;  %v5923_v51 = vld [vmem:[%s5768_s22 + $0x10] sm:$0xff]  }
 0x1c5   : > { %v5699_v18 = vpop.f32.mrf.mxu0 }
 0x1c6   : > { %2740 = vrot.lane.b32.xlu0 %v4135_v52, %s4291_s15 }
 0x1c7   : > { %v5702_v0 = vpop.f32.mrf.mxu0 }
 0x1c8   : > { %v4139_v9 = vpack.c.bf16 %v5702_v0, %v5699_v18 }
 0x1c9   : > { %v5706_v6 = vpop.f32.mrf.mxu0 }
 0x1ca   : > { %2750 = vrot.lane.b32.xlu0 %v4139_v9, %s4291_s15  ;;  %v4159_v41 = vpack.c.bf16 %v5706_v6, %v5699_v18  ;;  %v5914_v18 = vld [vmem:[%s5768_s22 + $0x8] sm:$0xff]  }
 0x1cb   : > { %v5711_v8 = vpop.f32.mrf.mxu0 }
 0x1cc   : > { %v4143_v5 = vpack.c.bf16 %v5711_v8, %v5706_v6 }
 0x1ce   : > { %2625 = vrot.lane.b32.xlu0 %v4139_v9, %s4292_s20 }
 0x1d2   : > { %2760 = vrot.lane.b32.xlu0 %v4143_v5, %s4291_s15 }
 0x1d6   : > { %2605 = vrot.lane.b32.xlu0 %v4131_v27, %s4292_s20 }
 0x1da   : > { %2635 = vrot.lane.b32.xlu0 %v4143_v5, %s4292_s20 }
 0x1de   : > { %2615 = vrot.lane.b32.xlu0 %v4135_v52, %s4292_s20 }
 0x1ed   : > { %v5720_v25 = vpop.f32.mrf.mxu1 }
 0x1ef   : > { %v5722_v54 = vpop.f32.mrf.mxu1 }
 0x1f0   : > { %v4132_v47 = vpack.c.bf16 %v5722_v54, %v5720_v25 }
 0x1f1   : > { %v5726_v35 = vpop.f32.mrf.mxu1 }
 0x1f2   : > { %2732 = vrot.lane.b32.xlu1 %v4132_v47, %s4291_s15 }
 0x1f3   : > { %v5731_v50 = vpop.f32.mrf.mxu1 }
 0x1f4   : > { %v4136_v55 = vpack.c.bf16 %v5731_v50, %v5726_v35 }
 0x1f5   : > { %v5737_v46 = vpop.f32.mrf.mxu1 }
 0x1f6   : > { %2742 = vrot.lane.b32.xlu1 %v4136_v55, %s4291_s15 }
 0x1f7   : > { %v5740_v12 = vpop.f32.mrf.mxu1 }
 0x1f8   : > { %v4140_v59 = vpack.c.bf16 %v5740_v12, %v5737_v46 }
 0x1f9   : > { %v5744_v42 = vpop.f32.mrf.mxu1 }
 0x1fa   : > { %2752 = vrot.lane.b32.xlu1 %v4140_v59, %s4291_s15 }
 0x1fb   : > { %v5749_v22 = vpop.f32.mrf.mxu1 }
 0x1fc   : > { %v4162_v48 = vpack.c.bf16 %v5749_v22, %v5740_v12  ;;  %v4144_v58 = vpack.c.bf16 %v5749_v22, %v5744_v42  ;;  %v6428_v22 = vpack.c.bf16 %v5726_v35, %v5720_v25 }
 0x1fe   : > { %2627 = vrot.lane.b32.xlu1 %v4140_v59, %s4292_s20 }
 0x202   : > { %2762 = vrot.lane.b32.xlu1 %v4144_v58, %s4291_s15 }
 0x206   : > { %2607 = vrot.lane.b32.xlu1 %v4132_v47, %s4292_s20 }
 0x20a   : > { %2637 = vrot.lane.b32.xlu1 %v4144_v58, %s4292_s20 }
 0x20e   : > { %2617 = vrot.lane.b32.xlu1 %v4136_v55, %s4292_s20 }
 0x21d   : > { %v5770_v24 = vpop.f32.mrf.mxu0 }
 0x21f   : > { %v5772_v29 = vpop.f32.mrf.mxu0 }
 0x220   : > { %v4133_v45 = vpack.c.bf16 %v5772_v29, %v5770_v24 }
 0x221   : > { %v5774_v26 = vpop.f32.mrf.mxu0 }
 0x223   : > { %v5778_v39 = vpop.f32.mrf.mxu0 }
 0x224   : > { %v4137_v34 = vpack.c.bf16 %v5778_v39, %v5774_v26 }
 0x225   : > { %v5782_v31 = vpop.f32.mrf.mxu0 }
 0x227   : > { %v5784_v20 = vpop.f32.mrf.mxu0 }
 0x228   : > { %v4141_v49 = vpack.c.bf16 %v5784_v20, %v5782_v31 }
 0x229   : > { %v5788_v62 = vpop.f32.mrf.mxu0 }
 0x22a   : > { %2754 = vrot.lane.b32.xlu0 %v4141_v49, %s4291_s15 }
 0x22b   : > { %v5793_v37 = vpop.f32.mrf.mxu0 }
 0x22c   : > { %v4145_v38 = vpack.c.bf16 %v5793_v37, %v5788_v62 }
 0x22e   : > { %2734 = vrot.lane.b32.xlu0 %v4133_v45, %s4291_s15  ;;  %2764 = vrot.lane.b32.xlu1 %v4145_v38, %s4291_s15 }
 0x232   : > { %2629 = vrot.lane.b32.xlu0 %v4141_v49, %s4292_s20  ;;  %2744 = vrot.lane.b32.xlu1 %v4137_v34, %s4291_s15 }
 0x236   : > { %2609 = vrot.lane.b32.xlu0 %v4133_v45, %s4292_s20  ;;  %2639 = vrot.lane.b32.xlu1 %v4145_v38, %s4292_s20  ;;  %v2731_v38 = vpop.permute.xlu0 %2730 }
 0x23a   : > { %v2413_v21 = vpop.f32.mrf.mxu1  ;;  %2619 = vrot.lane.b32.xlu1 %v4137_v34, %s4292_s20 }
 0x23c   : > { %v2415_v4 = vpop.f32.mrf.mxu1 }
 0x23d   : > { %v4183_v23 = vpop.f32.mrf.mxu0  ;;  %v4134_v52 = vpack.c.bf16 %v2415_v4, %v2413_v21 }
 0x23e   : > { %v2417_v19 = vpop.f32.mrf.mxu1 }
 0x23f   : > { %v5810_v33 = vpack.c.bf16 %v2417_v19, %v2413_v21  ;;  %v4184_v28 = vpop.f32.mrf.mxu0 }
 0x240   : > { %v2419_v13 = vpop.f32.mrf.mxu1  ;;  %v4185_v58 = vadd.f32 %v4184_v28, %v4183_v23 }
 0x241   : > { %v5812_v63 = vpack.c.bf16 %v2419_v13, %v2415_v4  ;;  %v4186_v10 = vpop.f32.mrf.mxu0  ;;  %v4138_v47 = vpack.c.bf16 %v2419_v13, %v2417_v19  ;;  %v2741_v19 = vpop.permute.xlu0 %2740 }
 0x242   : > { %v2423_v15 = vpop.f32.mrf.mxu1  ;;  %v4147_v34 = vpack.c.bf16 %v4185_v58, %v4185_v58 }
 0x243   : > { %v4187_v36 = vpop.f32.mrf.mxu0 }
 0x244   : > { %v5814_v40 = vpop.f32.mrf.mxu1  ;;  %v4188_v21 = vadd.f32 %v4187_v36, %v4186_v10 }
 0x245   : > { %v4142_v53 = vpack.c.bf16 %v5814_v40, %v2423_v15  ;;  %v4189_v1 = vpop.f32.mrf.mxu0  ;;  %v2751_v23 = vpop.permute.xlu0 %2750 }
 0x246   : > { %v2427_v7 = vpop.f32.mrf.mxu1  ;;  %v4148_v13 = vpack.c.bf16 %v4188_v21, %v4188_v21 }
 0x247   : > { %v5817_v57 = vpack.c.bf16 %v2427_v7, %v2423_v15  ;;  %2756 = vrot.lane.b32.xlu0 %v4142_v53, %s4291_s15  ;;  %v4190_v27 = vpop.f32.mrf.mxu0 }
 0x248   : > { %v5820_v17 = vpop.f32.mrf.mxu1  ;;  %v4191_v55 = vadd.f32 %v4190_v27, %v4189_v1 }
 0x249   : > { %v4146_v9 = vpack.c.bf16 %v5820_v17, %v2427_v7  ;;  %v4192_v5 = vpop.f32.mrf.mxu0  ;;  %v2626_v15 = vpop.permute.xlu0 %2625  ;;  %v2780_v7 = vrot.slane %v2751_v23, 4 }
 0x24a   : > { %v4149_v49 = vpack.c.bf16 %v4191_v55, %v4191_v55  ;;  %v2655_v32 = vrot.slane %v2626_v15, 4 }
 0x24b   : > { %2736 = vrot.lane.b32.xlu0 %v4134_v52, %s4291_s15  ;;  %2766 = vrot.lane.b32.xlu1 %v4146_v9, %s4291_s15  ;;  %v4193_v59 = vpop.f32.mrf.mxu0 }
 0x24c   : > { %v4194_v45 = vadd.f32 %v4193_v59, %v4192_v5  ;;  %v2775_v5 = vrot.slane %v2741_v19, 4 }
 0x24d   : > { %v2761_v36 = vpop.permute.xlu0 %2760 }
 0x24e   : > { %v4150_v4 = vpack.c.bf16 %v4194_v45, %v4194_v45 }
 0x24f   : > { %2631 = vrot.lane.b32.xlu0 %v4142_v53, %s4292_s20  ;;  %2746 = vrot.lane.b32.xlu1 %v4138_v47, %s4291_s15 }
 0x253   : > { %2611 = vrot.lane.b32.xlu0 %v4134_v52, %s4292_s20  ;;  %2641 = vrot.lane.b32.xlu1 %v4146_v9, %s4292_s20  ;;  %v2606_v52 = vpop.permute.xlu0 %2605 }
 0x257   : > { %2621 = vrot.lane.b32.xlu1 %v4138_v47, %s4292_s20  ;;  %2758 = vrot.lane.b32.xlu0 %v4149_v49, %s4291_s15  ;;  %v2785_v47 = vrot.slane %v2761_v36, 4 }
 0x25b   : > { %2768 = vrot.lane.b32.xlu1 %v4150_v4, %s4291_s15  ;;  %2738 = vrot.lane.b32.xlu0 %v4147_v34, %s4291_s15 }
 0x25f   : > { %2748 = vrot.lane.b32.xlu1 %v4148_v13, %s4291_s15  ;;  %2633 = vrot.lane.b32.xlu0 %v4149_v49, %s4292_s20  ;;  %v2770_v49 = vrot.slane %v2731_v38, 4 }
 0x263   : > { %2643 = vrot.lane.b32.xlu1 %v4150_v4, %s4292_s20  ;;  %2613 = vrot.lane.b32.xlu0 %v4147_v34, %s4292_s20  ;;  %v2636_v4 = vpop.permute.xlu0 %2635 }
 0x264   : > { %v5837_v28 = vpop.permute.xlu1 %2732 }
 0x265   : > { %v2771_v55 = vrot.slane %v5837_v28, 4 }
 0x267   : > { %2623 = vrot.lane.b32.xlu1 %v4148_v13, %s4292_s20  ;;  %v2790_v13 = vsel %vm317_vm1, %v2770_v49, %v2771_v55  ;;  %v2616_v43 = vpop.permute.xlu0 %2615 }
 0x268   : > { %v5840_v10 = vpop.permute.xlu1 %2742 }
 0x269   : > { %v2776_v9 = vrot.slane %v5840_v10, 4 }
 0x26b   : > { %v2799_v45 = vsel %vm317_vm1, %v2775_v5, %v2776_v9 }
 0x26c   : > { %v5842_v53 = vpop.permute.xlu1 %2752  ;;  %v2800_v5 = vsel %vm2791_vm7, %v2741_v19, %v2799_v45 }
 0x26d   : > { %v2781_v1 = vrot.slane %v5842_v53, 4 }
 0x26f   : > { %v2807_v59 = vsel %vm317_vm1, %v2780_v7, %v2781_v1 }
 0x270   : > { %v5845_v27 = vpop.permute.xlu1 %2627  ;;  %v2808_v21 = vsel %vm2791_vm7, %v2751_v23, %v2807_v59  ;;  %v2792_v59 = vsel %vm2791_vm7, %v2731_v38, %v2790_v13  ;;  %v2650_v13 = vrot.slane %v2616_v43, 4 }
 0x271   : > { %v2656_v2 = vrot.slane %v5845_v27, 4  ;;  %v4081_v16 = vcombine.high %v2792_v59, %v2800_v5 }
 0x274   : > { %v5852_v58 = vpop.permute.xlu1 %2762 }
 0x275   : > { %v2786_v34 = vrot.slane %v5852_v58, 4 }
 0x277   : > { %v2815_v7 = vsel %vm317_vm1, %v2785_v47, %v2786_v34  ;;  %v2660_v47 = vrot.slane %v2636_v4, 4 }
 0x278   : > { %v5865_v60 = vpop.permute.xlu1 %2607  ;;  %v2816_v56 = vsel %vm2791_vm7, %v2761_v36, %v2815_v7  ;;  %v2682_v36 = vsel %vm317_vm1, %v2655_v32, %v2656_v2 }
 0x279   : > { %v4088_v14 = vcombine.low %v2808_v21, %v2816_v56  ;;  %v4089_v23 = vcombine.high %v2808_v21, %v2816_v56  ;;  %v2646_v19 = vrot.slane %v5865_v60, 4  ;;  %v4080_v56 = vcombine.low %v2792_v59, %v2800_v5 }
 0x27a   : > { %v2645_v21 = vrot.slane %v2606_v52, 4  ;;  %v2683_v7 = vsel %vm2666_vm8, %v2626_v15, %v2682_v36 }
 0x27b   : > { %3228 = vmatprep.subr.bf16.mxu1 %v4089_v23 }
 0x27c   : > { %v5871_v49 = vpop.permute.xlu1 %2637  ;;  %3229 = vmatpush1.bf16.msra.mxu1 %v4088_v14  ;;  %v2665_v32 = vsel %vm317_vm1, %v2645_v21, %v2646_v19  ;;  %v4160_v21 = vpack.c.bf16 %v5711_v8, %v5702_v0  ;;  %v5910_v0 = vld [vmem:[#allocation2 + $0x438] sm:$0xff] }
 0x27d   : > { %v2661_v45 = vrot.slane %v5871_v49, 4  ;;  %3230 = vmatprep.subr.bf16.mxu1 %v4081_v16 }
 0x27f   : > { %v2690_v38 = vsel %vm317_vm1, %v2660_v47, %v2661_v45 }
 0x280   : > { %v5881_v14 = vpop.permute.xlu1 %2617  ;;  %3231 = vmatpush1.bf16.msra.mxu1 %v4080_v56  ;;  %v2691_v23 = vsel %vm2666_vm8, %v2636_v4, %v2690_v38  ;;  %v2667_v56 = vsel %vm2666_vm8, %v2606_v52, %v2665_v32  ;;  %v5903_v52 = vld [vmem:[%s5768_s22] sm:$0xff]  }
 0x281   : > { %v2651_v16 = vrot.slane %v5881_v14, 4  ;;  %v4072_v5 = vcombine.low %v2683_v7, %v2691_v23  ;;  %v4073_v59 = vcombine.high %v2683_v7, %v2691_v23 }
 0x283   : > { %v2674_v47 = vsel %vm317_vm1, %v2650_v13, %v2651_v16  ;;  %3232 = vmatprep.subr.bf16.mxu1 %v4073_v59  ;;  %v5965_v59 = vld [vmem:[%s5768_s22 + $0x18] sm:$0xff]  }
 0x284   : > { %3233 = vmatpush1.bf16.msra.mxu1 %v4072_v5  ;;  %v2675_v15 = vsel %vm2666_vm8, %v2616_v43, %v2674_v47 }
 0x285   : > { %v4064_v4 = vcombine.low %v2667_v56, %v2675_v15  ;;  %v4065_v36 = vcombine.high %v2667_v56, %v2675_v15 }
 0x287   : > { %3234 = vmatprep.subr.bf16.mxu1 %v4065_v36 }
 0x288   : > { %3235 = vmatpush1.bf16.msra.mxu1 %v4064_v4 }
 0x289   : > { %3236 = vmatprep.subr.bf16.mxu1 %v4160_v21 }
 0x28c   : > { %3237 = vmatpush1.bf16.msra.mxu1 %v4159_v41 }
 0x28d   : > { %3238 = vmatprep.subr.bf16.mxu1 %v4152_v3 }
 0x290   : > { %3239 = vmatpush1.bf16.msra.mxu1 %v4151_v61 }
 0x293   : > { %4096 = vmatmul.mubr.msk.bf16.vlgmr.msra.gmra.mxu1 %vm3199_vm9, %v5903_v52 }
 0x294   : > { %3266 = vmatprep.mubr.bf16.mxu1 %v5910_v0 }
 0x29b   : > { %4097 = vmatmul.mubr.msk.bf16.gmra.mxu1 %vm3199_vm9, %v5914_v18 }
 0x29c   : > { %v5918_v44 = vpop.permute.xlu0 %2754  ;;  %3276 = vmatprep.mubr.bf16.mxu1 %v5910_v0 }
 0x29d   : > { %v2782_v11 = vrot.slane %v5918_v44, 4 }
 0x29f   : > { %v2809_v3 = vsel %vm317_vm1, %v2781_v1, %v2782_v11 }
 0x2a0   : > { %v5925_v61 = vpop.permute.xlu0 %2734  ;;  %v5927_v30 = vpop.permute.xlu1 %2764  ;;  %v2810_v13 = vsel %vm2791_vm7, %v5842_v53, %v2809_v3 }
 0x2a1   : > { %v2772_v6 = vrot.slane %v5925_v61, 4  ;;  %v2787_v41 = vrot.slane %v5927_v30, 4 }
 0x2a3   : > { %v2817_v8 = vsel %vm317_vm1, %v2786_v34, %v2787_v41  ;;  %4098 = vmatmul.mubr.msk.bf16.gmra.mxu1 %vm3199_vm9, %v5923_v51  ;;  %v2793_v43 = vsel %vm317_vm1, %v2771_v55, %v2772_v6 }
 0x2a4   : > { %v5948_v1 = vpop.permute.xlu0 %2629  ;;  %v5950_v38 = vpop.permute.xlu1 %2744  ;;  %v2818_v7 = vsel %vm2791_vm7, %v5852_v58, %v2817_v8  ;;  %3286 = vmatprep.mubr.bf16.mxu1 %v5910_v0  ;;  %v2794_v56 = vsel %vm2791_vm7, %v5837_v28, %v2793_v43 }
 0x2a5   : > { %v2657_v34 = vrot.slane %v5948_v1, 4  ;;  %v2777_v23 = vrot.slane %v5950_v38, 4  ;;  %v4090_v32 = vcombine.low %v2810_v13, %v2818_v7  ;;  %v4091_v5 = vcombine.high %v2810_v13, %v2818_v7 }
 0x2a7   : > { %v2801_v55 = vsel %vm317_vm1, %v2776_v9, %v2777_v23  ;;  %3341 = vmatprep.subr.bf16.mxu0 %v4091_v5  ;;  %v2684_v53 = vsel %vm317_vm1, %v2656_v2, %v2657_v34 }
 0x2a8   : > { %v5972_v58 = vpop.permute.xlu0 %2609  ;;  %3342 = vmatpush1.bf16.msra.mxu0 %v4090_v32  ;;  %v5974_v47 = vpop.permute.xlu1 %2639  ;;  %v2802_v9 = vsel %vm2791_vm7, %v5840_v10, %v2801_v55  ;;  %v2685_v10 = vsel %vm2666_vm8, %v5845_v27, %v2684_v53  ;;  %v6427_v53 = vpack.c.bf16 %v5731_v50, %v5722_v54 }
 0x2a9   : > { %v2647_v15 = vrot.slane %v5972_v58, 4  ;;  %v2662_v4 = vrot.slane %v5974_v47, 4  ;;  %v4082_v36 = vcombine.low %v2794_v56, %v2802_v9  ;;  %v4083_v21 = vcombine.high %v2794_v56, %v2802_v9  ;;  %v6051_v56 = vld [vmem:[%s5768_s22 + $0x30] sm:$0xff]  }
 0x2ab   : > { %v2692_v2 = vsel %vm317_vm1, %v2661_v45, %v2662_v4  ;;  %3343 = vmatprep.subr.bf16.mxu0 %v4083_v21  ;;  %4099 = vmatmul.mubr.msk.bf16.gmra.mxu1 %vm3199_vm9, %v5965_v59  ;;  %v2668_v45 = vsel %vm317_vm1, %v2646_v19, %v2647_v15 }
 0x2ac   : > { %3344 = vmatpush1.bf16.msra.mxu0 %v4082_v36  ;;  %v5989_v28 = vpop.permute.xlu1 %2619  ;;  %v2693_v3 = vsel %vm2666_vm8, %v5871_v49, %v2692_v2  ;;  %3296 = vmatprep.mubr.bf16.mxu1 %v5910_v0  ;;  %v6008_v49 = vld [vmem:[%s5768_s22 + $0x20] sm:$0xff]   ;;  %v2669_v7 = vsel %vm2666_vm8, %v5865_v60, %v2668_v45 }
 0x2ad   : > { %v2652_v8 = vrot.slane %v5989_v28, 4  ;;  %v4074_v43 = vcombine.low %v2685_v10, %v2693_v3  ;;  %v4075_v13 = vcombine.high %v2685_v10, %v2693_v3 }
 0x2af   : > { %v2676_v27 = vsel %vm317_vm1, %v2651_v16, %v2652_v8  ;;  %3345 = vmatprep.subr.bf16.mxu0 %v4075_v13  ;;  %v6021_v16 = vld [vmem:[%s5768_s22 + $0x28] sm:$0xff]  }
 0x2b0   : > { %3346 = vmatpush1.bf16.msra.mxu0 %v4074_v43  ;;  %v2677_v19 = vsel %vm2666_vm8, %v5881_v14, %v2676_v27  ;;  %v6426_v14 = vpack.c.bf16 %v5744_v42, %v5737_v46 }
 0x2b1   : > { %v4066_v32 = vcombine.low %v2669_v7, %v2677_v19  ;;  %v4067_v5 = vcombine.high %v2669_v7, %v2677_v19  ;;  %v6094_v19 = vld [vmem:[%s5768_s22 + $0x38] sm:$0xff]  }
 0x2b3   : > { %3347 = vmatprep.subr.bf16.mxu0 %v4067_v5  ;;  %4100 = vmatmul.mubr.msk.bf16.gmra.mxu1 %vm3199_vm9, %v6008_v49 }
 0x2b4   : > { %3348 = vmatpush1.bf16.msra.mxu0 %v4066_v32  ;;  %3306 = vmatprep.mubr.bf16.mxu1 %v5910_v0 }
 0x2b5   : > { %3349 = vmatprep.subr.bf16.mxu0 %v4162_v48 }
 0x2b8   : > { %3350 = vmatpush1.bf16.msra.mxu0 %v6426_v14 }
 0x2b9   : > { %v6023_v60 = vpop.permute.xlu0 %2756  ;;  %3351 = vmatprep.subr.bf16.mxu0 %v6427_v53 }
 0x2ba   : > { %v2783_v55 = vrot.slane %v6023_v60, 4 }
 0x2bb   : > { %4101 = vmatmul.mubr.msk.bf16.gmra.mxu1 %vm3199_vm9, %v6021_v16 }
 0x2bc   : > { %3352 = vmatpush1.bf16.msra.mxu0 %v6428_v22  ;;  %3316 = vmatprep.mubr.bf16.mxu1 %v5910_v0  ;;  %v2811_v46 = vsel %vm317_vm1, %v2782_v11, %v2783_v55 }
 0x2bd   : > { %v6034_v12 = vpop.permute.xlu0 %2736  ;;  %v6039_v48 = vpop.permute.xlu1 %2766  ;;  %v2812_v9 = vsel %vm2791_vm7, %v5918_v44, %v2811_v46 }
 0x2be   : > { %v2773_v54 = vrot.slane %v6034_v12, 4  ;;  %v2788_v50 = vrot.slane %v6039_v48, 4 }
 0x2bf   : > { %4104 = vmatmul.mubr.msk.bf16.vlgmr.msra.gmra.mxu0 %vm3199_vm9, %v5903_v52 }
 0x2c0   : > { %v2819_v42 = vsel %vm317_vm1, %v2787_v41, %v2788_v50  ;;  %v2795_v25 = vsel %vm317_vm1, %v2772_v6, %v2773_v54  ;;  %3379 = vmatprep.mubr.bf16.mxu0 %v5910_v0 }
 0x2c1   : > { %v6058_v35 = vpop.permute.xlu0 %2631  ;;  %v6060_v11 = vpop.permute.xlu1 %2746  ;;  %v2820_v36 = vsel %vm2791_vm7, %v5927_v30, %v2819_v42  ;;  %v2796_v45 = vsel %vm2791_vm7, %v5925_v61, %v2795_v25 }
 0x2c2   : > { %v2658_v41 = vrot.slane %v6058_v35, 4  ;;  %v2778_v21 = vrot.slane %v6060_v11, 4  ;;  %v4092_v2 = vcombine.low %v2812_v9, %v2820_v36  ;;  %v4093_v10 = vcombine.high %v2812_v9, %v2820_v36 }
 0x2c3   : > { %4102 = vmatmul.mubr.msk.bf16.gmra.mxu1 %vm3199_vm9, %v6051_v56 }
 0x2c4   : > { %v2803_v6 = vsel %vm317_vm1, %v2777_v23, %v2778_v21  ;;  %3454 = vmatprep.subr.bf16.mxu1 %v4093_v10  ;;  %v2686_v44 = vsel %vm317_vm1, %v2657_v34, %v2658_v41  ;;  %3326 = vmatprep.mubr.bf16.mxu1 %v5910_v0 }
 0x2c5   : > { %v6079_v30 = vpop.permute.xlu0 %2611  ;;  %v6081_v3 = vpop.permute.xlu1 %2641  ;;  %3455 = vmatpush1.bf16.msra.mxu1 %v4092_v2  ;;  %v2804_v23 = vsel %vm2791_vm7, %v5950_v38, %v2803_v6  ;;  %v2687_v5 = vsel %vm2666_vm8, %v5948_v1, %v2686_v44 }
 0x2c6   : > { %v2648_v43 = vrot.slane %v6079_v30, 4  ;;  %v2663_v13 = vrot.slane %v6081_v3, 4  ;;  %v4084_v27 = vcombine.low %v2796_v45, %v2804_v23  ;;  %v4085_v7 = vcombine.high %v2796_v45, %v2804_v23 }
 0x2c7   : > { %4105 = vmatmul.mubr.msk.bf16.gmra.mxu0 %vm3199_vm9, %v5914_v18 }
 0x2c8   : > { %v2694_v34 = vsel %vm317_vm1, %v2662_v4, %v2663_v13  ;;  %3456 = vmatprep.subr.bf16.mxu1 %v4085_v7  ;;  %v2670_v61 = vsel %vm317_vm1, %v2647_v15, %v2648_v43  ;;  %3389 = vmatprep.mubr.bf16.mxu0 %v5910_v0 }
 0x2c9   : > { %v6103_v38 = vpop.permute.xlu1 %2621  ;;  %v2759_v32 = vpop.permute.xlu0 %2758  ;;  %3457 = vmatpush1.bf16.msra.mxu1 %v4084_v27  ;;  %v2695_v4 = vsel %vm2666_vm8, %v5974_v47, %v2694_v34  ;;  %v2671_v47 = vsel %vm2666_vm8, %v5972_v58, %v2670_v61 }
 0x2ca   : > { %v2653_v14 = vrot.slane %v6103_v38, 4  ;;  %v2784_v53 = vrot.slane %v2759_v32, 4  ;;  %v4076_v22 = vcombine.low %v2687_v5, %v2695_v4  ;;  %v4077_v46 = vcombine.high %v2687_v5, %v2695_v4 }
 0x2cb   : > { %4103 = vmatmul.mubr.msk.bf16.gmra.mxu1 %vm3199_vm9, %v6094_v19  ;;  %v6431_v4 = vpack.c.bf16 %v5778_v39, %v5772_v29 }
 0x2cc   : > { %v2678_v15 = vsel %vm317_vm1, %v2652_v8, %v2653_v14  ;;  %3458 = vmatprep.subr.bf16.mxu1 %v4077_v46  ;;  %v2813_v1 = vsel %vm317_vm1, %v2783_v55, %v2784_v53  ;;  %3482 = vmatprep.mubr.bf16.mxu1 %v5910_v0 }
 0x2cd   : > { %v2769_v42 = vpop.permute.xlu1 %2768  ;;  %v2739_v25 = vpop.permute.xlu0 %2738  ;;  %3459 = vmatpush1.bf16.msra.mxu1 %v4076_v22  ;;  %v2679_v9 = vsel %vm2666_vm8, %v5989_v28, %v2678_v15  ;;  %v2814_v58 = vsel %vm2791_vm7, %v6023_v60, %v2813_v1 }
 0x2ce   : > { %v2789_v36 = vrot.slane %v2769_v42, 4  ;;  %v2774_v2 = vrot.slane %v2739_v25, 4  ;;  %v4068_v8 = vcombine.low %v2671_v47, %v2679_v9  ;;  %v4069_v10 = vcombine.high %v2671_v47, %v2679_v9 }
 0x2cf   : > { %4106 = vmatmul.mubr.msk.bf16.gmra.mxu0 %vm3199_vm9, %v5923_v51 }
 0x2d0   : > { %v2821_v6 = vsel %vm317_vm1, %v2788_v50, %v2789_v36  ;;  %3460 = vmatprep.subr.bf16.mxu1 %v4069_v10  ;;  %v2797_v55 = vsel %vm317_vm1, %v2773_v54, %v2774_v2  ;;  %3399 = vmatprep.mubr.bf16.mxu0 %v5910_v0  ;;  %v6429_v50 = vpack.c.bf16 %v5793_v37, %v5784_v20 }
 0x2d1   : > { %v2749_v44 = vpop.permute.xlu1 %2748  ;;  %v2634_v45 = vpop.permute.xlu0 %2633  ;;  %3461 = vmatpush1.bf16.msra.mxu1 %v4068_v8  ;;  %v2822_v28 = vsel %vm2791_vm7, %v6039_v48, %v2821_v6  ;;  %v6430_v48 = vpack.c.bf16 %v5788_v62, %v5782_v31  ;;  %v2798_v20 = vsel %vm2791_vm7, %v6034_v12, %v2797_v55  ;;  %v6432_v62 = vpack.c.bf16 %v5774_v26, %v5770_v24 }
 0x2d2   : > { %v2779_v23 = vrot.slane %v2749_v44, 4  ;;  %v2659_v27 = vrot.slane %v2634_v45, 4  ;;  %3462 = vmatprep.subr.bf16.mxu1 %v6429_v50  ;;  %v4094_v7 = vcombine.low %v2814_v58, %v2822_v28  ;;  %v4095_v34 = vcombine.high %v2814_v58, %v2822_v28 }
 0x2d4   : > { %v2805_v54 = vsel %vm317_vm1, %v2778_v21, %v2779_v23  ;;  %3567 = vmatprep.subr.bf16.mxu0 %v4095_v34  ;;  %v2688_v60 = vsel %vm317_vm1, %v2658_v41, %v2659_v27 }
 0x2d5   : > { %v2644_v61 = vpop.permute.xlu1 %2643  ;;  %v2614_v32 = vpop.permute.xlu0 %2613  ;;  %3463 = vmatpush1.bf16.msra.mxu1 %v6430_v48  ;;  %3568 = vmatpush1.bf16.msra.mxu0 %v4094_v7  ;;  %v2806_v37 = vsel %vm2791_vm7, %v6060_v11, %v2805_v54  ;;  %v2689_v12 = vsel %vm2666_vm8, %v6058_v35, %v2688_v60 }
 0x2d6   : > { %v2664_v5 = vrot.slane %v2644_v61, 4  ;;  %v2649_v21 = vrot.slane %v2614_v32, 4  ;;  %3464 = vmatprep.subr.bf16.mxu1 %v6431_v4  ;;  %v4086_v41 = vcombine.low %v2798_v20, %v2806_v37  ;;  %v4087_v53 = vcombine.high %v2798_v20, %v2806_v37 }
 0x2d7   : > { %4107 = vmatmul.mubr.msk.bf16.gmra.mxu0 %vm3199_vm9, %v5965_v59 }
 0x2d8   : > { %v2696_v22 = vsel %vm317_vm1, %v2663_v13, %v2664_v5  ;;  %3569 = vmatprep.subr.bf16.mxu0 %v4087_v53  ;;  %v2672_v39 = vsel %vm317_vm1, %v2648_v43, %v2649_v21  ;;  %3409 = vmatprep.mubr.bf16.mxu0 %v5910_v0 }
 0x2d9   : > { %v2624_v31 = vpop.permute.xlu1 %2623  ;;  %3465 = vmatpush1.bf16.msra.mxu1 %v6432_v62  ;;  %3570 = vmatpush1.bf16.msra.mxu0 %v4086_v41  ;;  %v2697_v29 = vsel %vm2666_vm8, %v6081_v3, %v2696_v22  ;;  %v2673_v26 = vsel %vm2666_vm8, %v6079_v30, %v2672_v39 }
 0x2da   : > { %v2654_v11 = vrot.slane %v2624_v31, 4  ;;  %4195 = vmatprep.subr.bf16.mxu1 %v4095_v34  ;;  %v4078_v13 = vcombine.low %v2689_v12, %v2697_v29  ;;  %v4079_v46 = vcombine.high %v2689_v12, %v2697_v29 }
 0x2dc   : > { %v2680_v24 = vsel %vm317_vm1, %v2653_v14, %v2654_v11  ;;  %3571 = vmatprep.subr.bf16.mxu0 %v4079_v46  ;;  %4112 = vmatmul.mubr.msk.bf16.vlgmr.msra.gmra.mxu1 %vm3199_vm9, %v5903_v52  ;;  %v4166_v14 = vpack.c.bf16 %v5820_v17, %v5814_v40 }
 0x2dd   : > { %4201 = vmatpush1.bf16.msra.mxu1 %v4094_v7  ;;  %3572 = vmatpush1.bf16.msra.mxu0 %v4078_v13  ;;  %v2681_v35 = vsel %vm2666_vm8, %v6103_v38, %v2680_v24 }
 0x2de   : > { %4196 = vmatprep.subr.bf16.mxu1 %v4087_v53  ;;  %v4070_v3 = vcombine.low %v2673_v26, %v2681_v35  ;;  %v4071_v43 = vcombine.high %v2673_v26, %v2681_v35  ;;  %3492 = vmatprep.mubr.bf16.mxu1 %v5910_v0 }
 0x2df   : > { %4108 = vmatmul.mubr.msk.bf16.gmra.mxu0 %vm3199_vm9, %v6008_v49 }
 0x2e0   : > { %3573 = vmatprep.subr.bf16.mxu0 %v4071_v43  ;;  %3419 = vmatprep.mubr.bf16.mxu0 %v5910_v0 }
 0x2e1   : > { %4202 = vmatpush1.bf16.msra.mxu1 %v4086_v41  ;;  %3574 = vmatpush1.bf16.msra.mxu0 %v4070_v3 }
 0x2e2   : > { %4197 = vmatprep.subr.bf16.mxu1 %v4079_v46  ;;  %3575 = vmatprep.subr.bf16.mxu0 %v4166_v14 }
 0x2e4   : > { %4113 = vmatmul.mubr.msk.bf16.gmra.mxu1 %vm3199_vm9, %v5914_v18 }
 0x2e5   : > { %4203 = vmatpush1.bf16.msra.mxu1 %v4078_v13  ;;  %3576 = vmatpush1.bf16.msra.mxu0 %v5817_v57 }
 0x2e6   : > { %4198 = vmatprep.subr.bf16.mxu1 %v4071_v43  ;;  %3577 = vmatprep.subr.bf16.mxu0 %v5812_v63 }
 0x2e7   : > { %3502 = vmatprep.mubr.bf16.mxu1 %v5910_v0  ;;  %4109 = vmatmul.mubr.msk.bf16.gmra.mxu0 %vm3199_vm9, %v6021_v16 }
 0x2e8   : > { %3429 = vmatprep.mubr.bf16.mxu0 %v5910_v0 }
 0x2e9   : > { %4204 = vmatpush1.bf16.msra.mxu1 %v4070_v3  ;;  %3578 = vmatpush1.bf16.msra.mxu0 %v5810_v33 }
 0x2ea   : > { %4199 = vmatprep.subr.bf16.mxu1 %v4166_v14 }
 0x2ec   : > { %4114 = vmatmul.mubr.msk.bf16.gmra.mxu1 %vm3199_vm9, %v5923_v51 }
 0x2ed   : > { %4205 = vmatpush1.bf16.msra.mxu1 %v5817_v57  ;;  %3512 = vmatprep.mubr.bf16.mxu1 %v5910_v0 }
 0x2ee   : > { %4200 = vmatprep.subr.bf16.mxu1 %v5812_v63 }
 0x2ef   : > { %4110 = vmatmul.mubr.msk.bf16.gmra.mxu0 %vm3199_vm9, %v6051_v56 }
 0x2f0   : > { %3439 = vmatprep.mubr.bf16.mxu0 %v5910_v0 }
 0x2f1   : > { %4206 = vmatpush1.bf16.msra.mxu1 %v5810_v33 }
 0x2f4   : > { %4115 = vmatmul.mubr.msk.bf16.gmra.mxu1 %vm3199_vm9, %v5965_v59 }
 0x2f5   : > { %3522 = vmatprep.mubr.bf16.mxu1 %v5910_v0 }
 0x2f7   : > { %4111 = vmatmul.mubr.msk.bf16.gmra.mxu0 %vm3199_vm9, %v6094_v19 }
 0x2f8   : > { %3595 = vmatprep.mubr.bf16.mxu0 %v5910_v0 }
 0x2fc   : > { %4116 = vmatmul.mubr.msk.bf16.gmra.mxu1 %vm3199_vm9, %v6008_v49 }
 0x2fd   : > { %3532 = vmatprep.mubr.bf16.mxu1 %v5910_v0 }
 0x2ff   : > { %4120 = vmatmul.mubr.msk.bf16.vlgmr.msra.gmra.mxu0 %vm3199_vm9, %v5903_v52 }
 0x300   : > { %3605 = vmatprep.mubr.bf16.mxu0 %v5910_v0 }
 0x304   : > { %4117 = vmatmul.mubr.msk.bf16.gmra.mxu1 %vm3199_vm9, %v6021_v16 }
 0x305   : > { %3542 = vmatprep.mubr.bf16.mxu1 %v5910_v0 }
 0x307   : > { %4121 = vmatmul.mubr.msk.bf16.gmra.mxu0 %vm3199_vm9, %v5914_v18 }
 0x308   : > { %3615 = vmatprep.mubr.bf16.mxu0 %v5910_v0 }
 0x30c   : > { %4118 = vmatmul.mubr.msk.bf16.gmra.mxu1 %vm3199_vm9, %v6051_v56 }
 0x30d   : > { %3552 = vmatprep.mubr.bf16.mxu1 %v5910_v0 }
 0x30f   : > { %4122 = vmatmul.mubr.msk.bf16.gmra.mxu0 %vm3199_vm9, %v5923_v51 }
 0x310   : > { %3625 = vmatprep.mubr.bf16.mxu0 %v5910_v0 }
 0x314   : > { %4119 = vmatmul.mubr.msk.bf16.gmra.mxu1 %vm3199_vm9, %v6094_v19 }
 0x315   : > { %3655 = vmatprep.mubr.bf16.mxu1 %v5910_v0 }
 0x317   : > { %4123 = vmatmul.mubr.msk.bf16.gmra.mxu0 %vm3199_vm9, %v5965_v59 }
 0x318   : > { %3635 = vmatprep.mubr.bf16.mxu0 %v5910_v0 }
 0x31c   : > { %4126 = vmatmul.mubr.msk.bf16.vlgmr.msra.gmra.mxu1 %vm3199_vm9, %v6051_v56 }
 0x31d   : > { %3665 = vmatprep.mubr.bf16.mxu1 %v5910_v0 }
 0x31f   : > { %4124 = vmatmul.mubr.msk.bf16.gmra.mxu0 %vm3199_vm9, %v6008_v49 }
 0x320   : > { %3645 = vmatprep.mubr.bf16.mxu0 %v5910_v0 }
 0x324   : > { %4127 = vmatmul.mubr.msk.bf16.gmra.mxu1 %vm3199_vm9, %v6094_v19 }
 0x327   : > { %4125 = vmatmul.mubr.msk.bf16.gmra.mxu0 %vm3199_vm9, %v6021_v16 }
 0x353   : > { %v3258_v33 = vpop.f32.mrf.mxu1 }
 0x354   : > { %3676 = vst [vmem:[%s6237_s19] sm:$0xff] %v3258_v33 }
 0x355   : > { %v3260_v63 = vpop.f32.mrf.mxu1 }
 0x356   : > { %3677 = vst [vmem:[%s6237_s19 + $0x8] sm:$0xff] %v3260_v63 }
 0x357   : > { %v3262_v40 = vpop.f32.mrf.mxu1 }
 0x358   : > { %3684 = vst [vmem:[%s6237_s19 + $0x40] sm:$0xff] %v3262_v40 }
 0x359   : > { %v3264_v57 = vpop.f32.mrf.mxu1 }
 0x35a   : > { %3685 = vst [vmem:[%s6237_s19 + $0x48] sm:$0xff] %v3264_v57 }
 0x35b   : > { %v3268_v17 = vpop.f32.mrf.mxu1 }
 0x35c   : > { %3692 = vst [vmem:[%s6237_s19 + $0x80] sm:$0xff] %v3268_v17 }
 0x35d   : > { %v3270_v52 = vpop.f32.mrf.mxu1 }
 0x35e   : > { %3693 = vst [vmem:[%s6237_s19 + $0x88] sm:$0xff] %v3270_v52 }
 0x35f   : > { %v3272_v0 = vpop.f32.mrf.mxu1 }
 0x360   : > { %3700 = vst [vmem:[%s6237_s19 + $0xc0] sm:$0xff] %v3272_v0 }
 0x361   : > { %v3274_v18 = vpop.f32.mrf.mxu1 }
 0x362   : > { %3701 = vst [vmem:[%s6237_s19 + $0xc8] sm:$0xff] %v3274_v18 }
 0x363   : > { %v3278_v51 = vpop.f32.mrf.mxu1 }
 0x364   : > { %3708 = vst [vmem:[%s6237_s19 + $0x100] sm:$0xff] %v3278_v51 }
 0x365   : > { %v3280_v59 = vpop.f32.mrf.mxu1 }
 0x366   : > { %3709 = vst [vmem:[%s6237_s19 + $0x108] sm:$0xff] %v3280_v59 }
 0x367   : > { %v3282_v49 = vpop.f32.mrf.mxu1 }
 0x368   : > { %3716 = vst [vmem:[%s6237_s19 + $0x140] sm:$0xff] %v3282_v49 }
 0x369   : > { %v3284_v16 = vpop.f32.mrf.mxu1 }
 0x36a   : > { %3717 = vst [vmem:[%s6237_s19 + $0x148] sm:$0xff] %v3284_v16 }
 0x36b   : > { %v3288_v56 = vpop.f32.mrf.mxu1 }
 0x36c   : > { %3724 = vst [vmem:[%s6237_s19 + $0x180] sm:$0xff] %v3288_v56 }
 0x36d   : > { %v3290_v30 = vpop.f32.mrf.mxu1 }
 0x36e   : > { %3725 = vst [vmem:[%s6237_s19 + $0x188] sm:$0xff] %v3290_v30 }
 0x36f   : > { %v3292_v19 = vpop.f32.mrf.mxu1 }
 0x370   : > { %3732 = vst [vmem:[%s6237_s19 + $0x1c0] sm:$0xff] %v3292_v19 }
 0x371   : > { %v3294_v38 = vpop.f32.mrf.mxu1 }
 0x372   : > { %3733 = vst [vmem:[%s6237_s19 + $0x1c8] sm:$0xff] %v3294_v38 }
 0x373   : > { %v3298_v15 = vpop.f32.mrf.mxu1 }
 0x374   : > { %3740 = vst [vmem:[%s6237_s19 + $0x200] sm:$0xff] %v3298_v15 }
 0x375   : > { %v3300_v1 = vpop.f32.mrf.mxu1 }
 0x376   : > { %3741 = vst [vmem:[%s6237_s19 + $0x208] sm:$0xff] %v3300_v1 }
 0x377   : > { %v3302_v42 = vpop.f32.mrf.mxu1 }
 0x378   : > { %3748 = vst [vmem:[%s6237_s19 + $0x240] sm:$0xff] %v3302_v42 }
 0x379   : > { %v3304_v25 = vpop.f32.mrf.mxu1 }
 0x37a   : > { %3749 = vst [vmem:[%s6237_s19 + $0x248] sm:$0xff] %v3304_v25 }
 0x37b   : > { %v3308_v47 = vpop.f32.mrf.mxu1 }
 0x37c   : > { %3756 = vst [vmem:[%s6237_s19 + $0x280] sm:$0xff] %v3308_v47 }
 0x37d   : > { %v3310_v9 = vpop.f32.mrf.mxu1 }
 0x37e   : > { %3757 = vst [vmem:[%s6237_s19 + $0x288] sm:$0xff] %v3310_v9 }
 0x37f   : > { %v3371_v36 = vpop.f32.mrf.mxu0  ;;  %v3312_v2 = vpop.f32.mrf.mxu1 }
 0x380   : > { %3678 = vst [vmem:[%s6237_s19 + $0x10] sm:$0xff] %v3371_v36  ;;  %3764 = vst [vmem:[%s6237_s19 + $0x2c0] sm:$0xff] %v3312_v2 }
 0x381   : > { %v3373_v8 = vpop.f32.mrf.mxu0  ;;  %v3314_v10 = vpop.f32.mrf.mxu1 }
 0x382   : > { %3679 = vst [vmem:[%s6237_s19 + $0x18] sm:$0xff] %v3373_v8  ;;  %3765 = vst [vmem:[%s6237_s19 + $0x2c8] sm:$0xff] %v3314_v10 }
 0x383   : > { %v3375_v6 = vpop.f32.mrf.mxu0  ;;  %v3318_v55 = vpop.f32.mrf.mxu1 }
 0x384   : > { %3686 = vst [vmem:[%s6237_s19 + $0x50] sm:$0xff] %v3375_v6  ;;  %3772 = vst [vmem:[%s6237_s19 + $0x300] sm:$0xff] %v3318_v55 }
 0x385   : > { %v3377_v44 = vpop.f32.mrf.mxu0  ;;  %v3320_v45 = vpop.f32.mrf.mxu1 }
 0x386   : > { %3687 = vst [vmem:[%s6237_s19 + $0x58] sm:$0xff] %v3377_v44  ;;  %3773 = vst [vmem:[%s6237_s19 + $0x308] sm:$0xff] %v3320_v45 }
 0x387   : > { %v3381_v58 = vpop.f32.mrf.mxu0  ;;  %v3322_v28 = vpop.f32.mrf.mxu1 }
 0x388   : > { %3694 = vst [vmem:[%s6237_s19 + $0x90] sm:$0xff] %v3381_v58  ;;  %3780 = vst [vmem:[%s6237_s19 + $0x340] sm:$0xff] %v3322_v28 }
 0x389   : > { %v3383_v23 = vpop.f32.mrf.mxu0  ;;  %v3324_v27 = vpop.f32.mrf.mxu1 }
 0x38a   : > { %3695 = vst [vmem:[%s6237_s19 + $0x98] sm:$0xff] %v3383_v23  ;;  %3781 = vst [vmem:[%s6237_s19 + $0x348] sm:$0xff] %v3324_v27 }
 0x38b   : > { %v3385_v50 = vpop.f32.mrf.mxu0  ;;  %v3328_v7 = vpop.f32.mrf.mxu1 }
 0x38c   : > { %3702 = vst [vmem:[%s6237_s19 + $0xd0] sm:$0xff] %v3385_v50  ;;  %3788 = vst [vmem:[%s6237_s19 + $0x380] sm:$0xff] %v3328_v7 }
 0x38d   : > { %v3387_v34 = vpop.f32.mrf.mxu0  ;;  %v3330_v54 = vpop.f32.mrf.mxu1 }
 0x38e   : > { %3703 = vst [vmem:[%s6237_s19 + $0xd8] sm:$0xff] %v3387_v34  ;;  %3789 = vst [vmem:[%s6237_s19 + $0x388] sm:$0xff] %v3330_v54 }
 0x38f   : > { %v3391_v60 = vpop.f32.mrf.mxu0  ;;  %v3332_v61 = vpop.f32.mrf.mxu1 }
 0x390   : > { %3710 = vst [vmem:[%s6237_s19 + $0x110] sm:$0xff] %v3391_v60  ;;  %3796 = vst [vmem:[%s6237_s19 + $0x3c0] sm:$0xff] %v3332_v61 }
 0x391   : > { %v3393_v32 = vpop.f32.mrf.mxu0  ;;  %v3334_v48 = vpop.f32.mrf.mxu1 }
 0x392   : > { %3711 = vst [vmem:[%s6237_s19 + $0x118] sm:$0xff] %v3393_v32  ;;  %3797 = vst [vmem:[%s6237_s19 + $0x3c8] sm:$0xff] %v3334_v48 }
 0x393   : > { %v3395_v20 = vpop.f32.mrf.mxu0 }
 0x394   : > { %3718 = vst [vmem:[%s6237_s19 + $0x150] sm:$0xff] %v3395_v20 }
 0x395   : > { %v3397_v37 = vpop.f32.mrf.mxu0 }
 0x396   : > { %3719 = vst [vmem:[%s6237_s19 + $0x158] sm:$0xff] %v3397_v37 }
 0x397   : > { %v3401_v5 = vpop.f32.mrf.mxu0 }
 0x398   : > { %3726 = vst [vmem:[%s6237_s19 + $0x190] sm:$0xff] %v3401_v5 }
 0x399   : > { %v3403_v21 = vpop.f32.mrf.mxu0 }
 0x39a   : > { %3727 = vst [vmem:[%s6237_s19 + $0x198] sm:$0xff] %v3403_v21 }
 0x39b   : > { %v3405_v4 = vpop.f32.mrf.mxu0 }
 0x39c   : > { %v3484_v41 = vpop.f32.mrf.mxu1  ;;  %3734 = vst [vmem:[%s6237_s19 + $0x1d0] sm:$0xff] %v3405_v4 }
 0x39d   : > { %3680 = vst [vmem:[%s6237_s19 + $0x20] sm:$0xff] %v3484_v41  ;;  %v3407_v53 = vpop.f32.mrf.mxu0 }
 0x39e   : > { %v3486_v22 = vpop.f32.mrf.mxu1  ;;  %3735 = vst [vmem:[%s6237_s19 + $0x1d8] sm:$0xff] %v3407_v53 }
 0x39f   : > { %3681 = vst [vmem:[%s6237_s19 + $0x28] sm:$0xff] %v3486_v22  ;;  %v3411_v31 = vpop.f32.mrf.mxu0 }
 0x3a0   : > { %v3488_v62 = vpop.f32.mrf.mxu1  ;;  %3742 = vst [vmem:[%s6237_s19 + $0x210] sm:$0xff] %v3411_v31 }
 0x3a1   : > { %3688 = vst [vmem:[%s6237_s19 + $0x60] sm:$0xff] %v3488_v62  ;;  %v3413_v12 = vpop.f32.mrf.mxu0 }
 0x3a2   : > { %v3490_v29 = vpop.f32.mrf.mxu1  ;;  %3743 = vst [vmem:[%s6237_s19 + $0x218] sm:$0xff] %v3413_v12 }
 0x3a3   : > { %3689 = vst [vmem:[%s6237_s19 + $0x68] sm:$0xff] %v3490_v29  ;;  %v3415_v39 = vpop.f32.mrf.mxu0 }
 0x3a4   : > { %v3494_v11 = vpop.f32.mrf.mxu1  ;;  %3750 = vst [vmem:[%s6237_s19 + $0x250] sm:$0xff] %v3415_v39 }
 0x3a5   : > { %3696 = vst [vmem:[%s6237_s19 + $0xa0] sm:$0xff] %v3494_v11  ;;  %v3417_v13 = vpop.f32.mrf.mxu0 }
 0x3a6   : > { %v3496_v46 = vpop.f32.mrf.mxu1  ;;  %3751 = vst [vmem:[%s6237_s19 + $0x258] sm:$0xff] %v3417_v13 }
 0x3a7   : > { %3697 = vst [vmem:[%s6237_s19 + $0xa8] sm:$0xff] %v3496_v46  ;;  %v3421_v24 = vpop.f32.mrf.mxu0 }
 0x3a8   : > { %v3498_v26 = vpop.f32.mrf.mxu1  ;;  %3758 = vst [vmem:[%s6237_s19 + $0x290] sm:$0xff] %v3421_v24 }
 0x3a9   : > { %3704 = vst [vmem:[%s6237_s19 + $0xe0] sm:$0xff] %v3498_v26  ;;  %v3423_v35 = vpop.f32.mrf.mxu0 }
 0x3aa   : > { %v3500_v3 = vpop.f32.mrf.mxu1  ;;  %3759 = vst [vmem:[%s6237_s19 + $0x298] sm:$0xff] %v3423_v35 }
 0x3ab   : > { %3705 = vst [vmem:[%s6237_s19 + $0xe8] sm:$0xff] %v3500_v3  ;;  %v3425_v43 = vpop.f32.mrf.mxu0 }
 0x3ac   : > { %v3504_v14 = vpop.f32.mrf.mxu1  ;;  %3766 = vst [vmem:[%s6237_s19 + $0x2d0] sm:$0xff] %v3425_v43 }
 0x3ad   : > { %3712 = vst [vmem:[%s6237_s19 + $0x120] sm:$0xff] %v3504_v14  ;;  %v3427_v33 = vpop.f32.mrf.mxu0 }
 0x3ae   : > { %v3506_v63 = vpop.f32.mrf.mxu1  ;;  %3767 = vst [vmem:[%s6237_s19 + $0x2d8] sm:$0xff] %v3427_v33 }
 0x3af   : > { %3713 = vst [vmem:[%s6237_s19 + $0x128] sm:$0xff] %v3506_v63  ;;  %v3431_v40 = vpop.f32.mrf.mxu0 }
 0x3b0   : > { %v3508_v57 = vpop.f32.mrf.mxu1  ;;  %3774 = vst [vmem:[%s6237_s19 + $0x310] sm:$0xff] %v3431_v40 }
 0x3b1   : > { %3720 = vst [vmem:[%s6237_s19 + $0x160] sm:$0xff] %v3508_v57  ;;  %v3433_v17 = vpop.f32.mrf.mxu0 }
 0x3b2   : > { %v3510_v52 = vpop.f32.mrf.mxu1  ;;  %3775 = vst [vmem:[%s6237_s19 + $0x318] sm:$0xff] %v3433_v17 }
 0x3b3   : > { %3721 = vst [vmem:[%s6237_s19 + $0x168] sm:$0xff] %v3510_v52  ;;  %v3435_v0 = vpop.f32.mrf.mxu0 }
 0x3b4   : > { %v3514_v18 = vpop.f32.mrf.mxu1  ;;  %3782 = vst [vmem:[%s6237_s19 + $0x350] sm:$0xff] %v3435_v0 }
 0x3b5   : > { %3728 = vst [vmem:[%s6237_s19 + $0x1a0] sm:$0xff] %v3514_v18  ;;  %v3437_v51 = vpop.f32.mrf.mxu0 }
 0x3b6   : > { %v3516_v59 = vpop.f32.mrf.mxu1  ;;  %3783 = vst [vmem:[%s6237_s19 + $0x358] sm:$0xff] %v3437_v51 }
 0x3b7   : > { %3729 = vst [vmem:[%s6237_s19 + $0x1a8] sm:$0xff] %v3516_v59  ;;  %v3441_v49 = vpop.f32.mrf.mxu0 }
 0x3b8   : > { %v3518_v16 = vpop.f32.mrf.mxu1  ;;  %3790 = vst [vmem:[%s6237_s19 + $0x390] sm:$0xff] %v3441_v49 }
 0x3b9   : > { %3736 = vst [vmem:[%s6237_s19 + $0x1e0] sm:$0xff] %v3518_v16  ;;  %v3443_v56 = vpop.f32.mrf.mxu0 }
 0x3ba   : > { %v3520_v30 = vpop.f32.mrf.mxu1  ;;  %3791 = vst [vmem:[%s6237_s19 + $0x398] sm:$0xff] %v3443_v56 }
 0x3bb   : > { %3737 = vst [vmem:[%s6237_s19 + $0x1e8] sm:$0xff] %v3520_v30  ;;  %v3445_v19 = vpop.f32.mrf.mxu0 }
 0x3bc   : > { %v3524_v38 = vpop.f32.mrf.mxu1  ;;  %3798 = vst [vmem:[%s6237_s19 + $0x3d0] sm:$0xff] %v3445_v19 }
 0x3bd   : > { %3744 = vst [vmem:[%s6237_s19 + $0x220] sm:$0xff] %v3524_v38  ;;  %v3447_v15 = vpop.f32.mrf.mxu0 }
 0x3be   : > { %v3526_v1 = vpop.f32.mrf.mxu1  ;;  %3799 = vst [vmem:[%s6237_s19 + $0x3d8] sm:$0xff] %v3447_v15 }
 0x3bf   : > { %3745 = vst [vmem:[%s6237_s19 + $0x228] sm:$0xff] %v3526_v1  ;;  %v3597_v42 = vpop.f32.mrf.mxu0 }
 0x3c0   : > { %v3528_v25 = vpop.f32.mrf.mxu1  ;;  %3682 = vst [vmem:[%s6237_s19 + $0x30] sm:$0xff] %v3597_v42 }
 0x3c1   : > { %3752 = vst [vmem:[%s6237_s19 + $0x260] sm:$0xff] %v3528_v25  ;;  %v3599_v47 = vpop.f32.mrf.mxu0 }
 0x3c2   : > { %v3530_v9 = vpop.f32.mrf.mxu1  ;;  %3683 = vst [vmem:[%s6237_s19 + $0x38] sm:$0xff] %v3599_v47 }
 0x3c3   : > { %3753 = vst [vmem:[%s6237_s19 + $0x268] sm:$0xff] %v3530_v9  ;;  %v3601_v36 = vpop.f32.mrf.mxu0 }
 0x3c4   : > { %v3534_v2 = vpop.f32.mrf.mxu1  ;;  %3690 = vst [vmem:[%s6237_s19 + $0x70] sm:$0xff] %v3601_v36 }
 0x3c5   : > { %3760 = vst [vmem:[%s6237_s19 + $0x2a0] sm:$0xff] %v3534_v2  ;;  %v3603_v8 = vpop.f32.mrf.mxu0 }
 0x3c6   : > { %v3536_v10 = vpop.f32.mrf.mxu1  ;;  %3691 = vst [vmem:[%s6237_s19 + $0x78] sm:$0xff] %v3603_v8 }
 0x3c7   : > { %3761 = vst [vmem:[%s6237_s19 + $0x2a8] sm:$0xff] %v3536_v10  ;;  %v3607_v6 = vpop.f32.mrf.mxu0 }
 0x3c8   : > { %v3538_v55 = vpop.f32.mrf.mxu1  ;;  %3698 = vst [vmem:[%s6237_s19 + $0xb0] sm:$0xff] %v3607_v6 }
 0x3c9   : > { %3768 = vst [vmem:[%s6237_s19 + $0x2e0] sm:$0xff] %v3538_v55  ;;  %v3609_v44 = vpop.f32.mrf.mxu0 }
 0x3ca   : > { %v3540_v45 = vpop.f32.mrf.mxu1  ;;  %3699 = vst [vmem:[%s6237_s19 + $0xb8] sm:$0xff] %v3609_v44 }
 0x3cb   : > { %3769 = vst [vmem:[%s6237_s19 + $0x2e8] sm:$0xff] %v3540_v45  ;;  %v3611_v58 = vpop.f32.mrf.mxu0 }
 0x3cc   : > { %v3544_v28 = vpop.f32.mrf.mxu1  ;;  %3706 = vst [vmem:[%s6237_s19 + $0xf0] sm:$0xff] %v3611_v58 }
 0x3cd   : > { %3776 = vst [vmem:[%s6237_s19 + $0x320] sm:$0xff] %v3544_v28  ;;  %v3613_v23 = vpop.f32.mrf.mxu0 }
 0x3ce   : > { %v3546_v27 = vpop.f32.mrf.mxu1  ;;  %3707 = vst [vmem:[%s6237_s19 + $0xf8] sm:$0xff] %v3613_v23 }
 0x3cf   : > { %3777 = vst [vmem:[%s6237_s19 + $0x328] sm:$0xff] %v3546_v27  ;;  %v3617_v50 = vpop.f32.mrf.mxu0 }
 0x3d0   : > { %v3548_v7 = vpop.f32.mrf.mxu1  ;;  %3714 = vst [vmem:[%s6237_s19 + $0x130] sm:$0xff] %v3617_v50 }
 0x3d1   : > { %3784 = vst [vmem:[%s6237_s19 + $0x360] sm:$0xff] %v3548_v7  ;;  %v3619_v34 = vpop.f32.mrf.mxu0 }
 0x3d2   : > { %v3550_v54 = vpop.f32.mrf.mxu1  ;;  %3715 = vst [vmem:[%s6237_s19 + $0x138] sm:$0xff] %v3619_v34 }
 0x3d3   : > { %3785 = vst [vmem:[%s6237_s19 + $0x368] sm:$0xff] %v3550_v54  ;;  %v3621_v60 = vpop.f32.mrf.mxu0 }
 0x3d4   : > { %v3554_v61 = vpop.f32.mrf.mxu1  ;;  %3722 = vst [vmem:[%s6237_s19 + $0x170] sm:$0xff] %v3621_v60 }
 0x3d5   : > { %3792 = vst [vmem:[%s6237_s19 + $0x3a0] sm:$0xff] %v3554_v61  ;;  %v3623_v32 = vpop.f32.mrf.mxu0 }
 0x3d6   : > { %v3556_v48 = vpop.f32.mrf.mxu1  ;;  %3723 = vst [vmem:[%s6237_s19 + $0x178] sm:$0xff] %v3623_v32 }
 0x3d7   : > { %3793 = vst [vmem:[%s6237_s19 + $0x3a8] sm:$0xff] %v3556_v48  ;;  %v3627_v20 = vpop.f32.mrf.mxu0 }
 0x3d8   : > { %v3558_v37 = vpop.f32.mrf.mxu1  ;;  %3730 = vst [vmem:[%s6237_s19 + $0x1b0] sm:$0xff] %v3627_v20 }
 0x3d9   : > { %3800 = vst [vmem:[%s6237_s19 + $0x3e0] sm:$0xff] %v3558_v37  ;;  %v3629_v5 = vpop.f32.mrf.mxu0 }
 0x3da   : > { %v3560_v21 = vpop.f32.mrf.mxu1  ;;  %3731 = vst [vmem:[%s6237_s19 + $0x1b8] sm:$0xff] %v3629_v5 }
 0x3db   : > { %3801 = vst [vmem:[%s6237_s19 + $0x3e8] sm:$0xff] %v3560_v21  ;;  %v3631_v4 = vpop.f32.mrf.mxu0 }
 0x3dc   : > { %v3657_v41 = vpop.f32.mrf.mxu1  ;;  %3738 = vst [vmem:[%s6237_s19 + $0x1f0] sm:$0xff] %v3631_v4 }
 0x3dd   : > { %3778 = vst [vmem:[%s6237_s19 + $0x330] sm:$0xff] %v3657_v41  ;;  %v3633_v53 = vpop.f32.mrf.mxu0 }
 0x3de   : > { %v3659_v22 = vpop.f32.mrf.mxu1  ;;  %3739 = vst [vmem:[%s6237_s19 + $0x1f8] sm:$0xff] %v3633_v53 }
 0x3df   : > { %3779 = vst [vmem:[%s6237_s19 + $0x338] sm:$0xff] %v3659_v22  ;;  %v3637_v31 = vpop.f32.mrf.mxu0 }
 0x3e0   : > { %v3661_v62 = vpop.f32.mrf.mxu1  ;;  %3746 = vst [vmem:[%s6237_s19 + $0x230] sm:$0xff] %v3637_v31 }
 0x3e1   : > { %3786 = vst [vmem:[%s6237_s19 + $0x370] sm:$0xff] %v3661_v62  ;;  %v3639_v12 = vpop.f32.mrf.mxu0 }
 0x3e2   : > { %v3663_v29 = vpop.f32.mrf.mxu1  ;;  %3747 = vst [vmem:[%s6237_s19 + $0x238] sm:$0xff] %v3639_v12 }
 0x3e3   : > { %3787 = vst [vmem:[%s6237_s19 + $0x378] sm:$0xff] %v3663_v29  ;;  %v3641_v39 = vpop.f32.mrf.mxu0 }
 0x3e4   : > { %v3667_v11 = vpop.f32.mrf.mxu1  ;;  %3754 = vst [vmem:[%s6237_s19 + $0x270] sm:$0xff] %v3641_v39 }
 0x3e5   : > { %3794 = vst [vmem:[%s6237_s19 + $0x3b0] sm:$0xff] %v3667_v11  ;;  %v3643_v13 = vpop.f32.mrf.mxu0 }
 0x3e6   : > { %v3669_v46 = vpop.f32.mrf.mxu1  ;;  %3755 = vst [vmem:[%s6237_s19 + $0x278] sm:$0xff] %v3643_v13 }
 0x3e7   : > { %3795 = vst [vmem:[%s6237_s19 + $0x3b8] sm:$0xff] %v3669_v46  ;;  %v3647_v24 = vpop.f32.mrf.mxu0 }
 0x3e8   : > { %v3671_v26 = vpop.f32.mrf.mxu1  ;;  %3762 = vst [vmem:[%s6237_s19 + $0x2b0] sm:$0xff] %v3647_v24 }
 0x3e9   : > { %3802 = vst [vmem:[%s6237_s19 + $0x3f0] sm:$0xff] %v3671_v26  ;;  %v3649_v35 = vpop.f32.mrf.mxu0 }
 0x3ea   : > { %v3673_v3 = vpop.f32.mrf.mxu1  ;;  %3763 = vst [vmem:[%s6237_s19 + $0x2b8] sm:$0xff] %v3649_v35 }
 0x3eb   : > { %3803 = vst [vmem:[%s6237_s19 + $0x3f8] sm:$0xff] %v3673_v3  ;;  %v3651_v43 = vpop.f32.mrf.mxu0 }
 0x3ec   : > { %3770 = vst [vmem:[%s6237_s19 + $0x2f0] sm:$0xff] %v3651_v43 }
 0x3ed   : > { %v3653_v14 = vpop.f32.mrf.mxu0 }
 0x3ee   : > { %3771 = vst [vmem:[%s6237_s19 + $0x2f8] sm:$0xff] %v3653_v14 }
 0x3ef PF: > { %s13_s12 = sadd.s32 1, %s4282_s12  }
 0x3f0   : > { %p10_p4 = scmp.ge.s32.totalorder %s13_s12, 4  }
 0x3f2   :  { %12 = sbr.rel (!%p10_p4) target bundleno = 1 (0x1), region = 62 }

</bundles_post_ra>
